<compile_context>
chip_gen: v7x
topology: tpu7x:2x2x1
jax: 0.10.0
libtpu: 0.0.40
codegen_flags: <defaults>
</compile_context>

<pallas_src>
import functools

import jax
import jax.numpy as jnp
from jax.experimental import pallas as pl
from jax.experimental.pallas import tpu as pltpu


def _conv_module_kernel(T, t_tile, D, K, pad, hp, ln_eps,
                        x_ref, lh_ref, rh_ref,
                        w1_ref, b1_ref, dww_ref, dwb_ref, w2_ref, b2_ref,
                        o_ref):
    t = pl.program_id(0)
    R = t_tile + 2 * hp

    # Extended time window [t*t_tile - hp, (t+1)*t_tile + hp).  hp is a multiple
    # of 8, so the main tile lands at a sublane-aligned offset inside `ext`.
    ext = jnp.concatenate([lh_ref[...], x_ref[...], rh_ref[...]], axis=0)
    ext = ext.astype(jnp.float32)

    # --- LayerNorm (affine folded into w1/b1), two-pass variance ---
    mu = jnp.mean(ext, axis=-1, keepdims=True)
    d = ext - mu
    var = jnp.mean(d * d, axis=-1, keepdims=True)
    h = d * jax.lax.rsqrt(var + ln_eps)

    # --- fused PointwiseConv (D -> 2D) on MXU (bf16 in, f32 acc) + GLU ---
    y = jnp.dot(h.astype(jnp.bfloat16), w1_ref[...],
                preferred_element_type=jnp.float32) + b1_ref[...]
    glu = y[:, :D] * jax.nn.sigmoid(y[:, D:])                    # (R, D) f32

    # Zero GLU rows whose time position falls outside [0, T): reproduces the
    # depthwise conv's 'same' zero padding and neutralizes clamped halo rows
    # and padded tail rows.  (R, 1) predicate, broadcast by where().
    r = jax.lax.broadcasted_iota(jnp.int32, (R, 1), 0)
    p = t * t_tile - hp + r
    glu = jnp.where((p >= 0) & (p < T), glu, 0.0)

    # --- DepthwiseConv (groups = D) with BatchNorm folded into weight/bias ---
    dww = dww_ref[...]                                           # (K, D)
    base = hp - pad
    acc = jnp.zeros((t_tile, D), jnp.float32)
    for j in range(K):                                           # static unroll
        acc = acc + glu[base + j:base + j + t_tile, :] * dww[j:j + 1, :]
    acc = acc + dwb_ref[...]

    # --- SiLU ---
    act = acc * jax.nn.sigmoid(acc)

    # --- PointwiseConv (D -> D); Dropout = identity in inference ---
    out = jnp.dot(act.astype(jnp.bfloat16), w2_ref[...],
                  preferred_element_type=jnp.float32) + b2_ref[...]
    o_ref[...] = out.astype(o_ref.dtype)


def _fold_params(params, bn_eps):
    """Wrapper-side inference-time parameter folding (LN affine -> PW1, BN -> DW)."""
    (ln_g, ln_b, w1a, w1b, b1a, b1b, dw_w, dw_b,
     bn_g, bn_b, bn_m, bn_v, w2, b2) = params
    D = w1a.shape[0]

    # Fuse the two pointwise-1 halves into a single (D, 2D) weight.
    w1 = jnp.concatenate([w1a, w1b], axis=1)                     # (D, 2D)
    b1 = jnp.concatenate([b1a, b1b], axis=1)                     # (1, 2D)
    # Fold LayerNorm affine: (h*g + beta) @ W + b == h @ (g.T*W) + (beta @ W + b)
    b1 = ln_b @ w1 + b1
    w1 = ln_g.reshape(D, 1) * w1

    # Fold inference BatchNorm into the depthwise conv.
    s = bn_g * jax.lax.rsqrt(bn_v + bn_eps)                      # (1, D)
    dw_w = dw_w * s
    dw_b = (dw_b - bn_m) * s + bn_b

    return (w1.astype(jnp.bfloat16), b1.astype(jnp.float32),
            dw_w.astype(jnp.float32), dw_b.astype(jnp.float32),
            w2.astype(jnp.bfloat16), b2.astype(jnp.float32))


def conv_module_forward(x, params, kernel_size, *, t_tile=None,
                        ln_eps=1e-5, bn_eps=1e-5):
    """Inference forward of the Conformer ConvolutionModule.

    x: (B, T, D) channel-last activations (f32 or bf16; output dtype == input
    dtype).  For best TPU performance D should be a multiple of 128.
    """
    B, T, D = x.shape
    out_dtype = x.dtype
    K = int(kernel_size)
    assert K % 2 == 1 and K >= 1, "odd kernel_size expected ('same' padding)"
    pad = (K - 1) // 2
    hp = max(8, ((pad + 7) // 8) * 8)          # halo rows, multiple of 8 sublanes

    # Large time tiles: per-grid-step overhead (~0.35us) is amortized and the
    # HBM pipeline stays near roofline; capped so f32 temporaries fit v7x VMEM.
    if t_tile is None:
        t_tile = 1024 if D <= 256 else (512 if D <= 512 else 256)
    t_tile = max(hp, ((t_tile + hp - 1) // hp) * hp)             # multiple of hp
    t_need = ((T + hp - 1) // hp) * hp
    t_tile = min(t_tile, t_need)
    nt = (T + t_tile - 1) // t_tile
    t_round = nt * t_tile

    w1, b1, dw_w, dw_b, w2, b2 = _fold_params(params, bn_eps)

    # Only wrapper-side copy: time-pad when t_tile does not divide T.
    x_in = x if t_round == T else jnp.pad(x, ((0, 0), (0, t_round - T), (0, 0)))

    kern = functools.partial(_conv_module_kernel, T, t_tile, D, K, pad, hp, ln_eps)

    r_blk = t_tile // hp            # halo blocks per tile
    n_blk = t_round // hp           # total halo blocks along time

    def full(shape):
        n = len(shape)
        return pl.BlockSpec(shape, lambda t, b, _n=n: (0,) * _n)

    in_specs = [
        # Main tile (auto-pipelined).
        pl.BlockSpec((None, t_tile, D), lambda t, b: (b, t, 0)),
        # Left / right halo blocks fetched from the SAME array (no HBM copy);
        # clamped indices only duplicate rows that the position-mask zeroes.
        pl.BlockSpec((None, hp, D),
                     lambda t, b: (b, jnp.maximum(t * r_blk - 1, 0), 0)),
        pl.BlockSpec((None, hp, D),
                     lambda t, b: (b, jnp.minimum((t + 1) * r_blk, n_blk - 1), 0)),
        full((D, 2 * D)), full((1, 2 * D)),   # fused pointwise-1 (LN folded), bf16 W
        full((K, D)), full((1, D)),           # depthwise (BN folded)
        full((D, D)), full((1, D)),           # pointwise-2, bf16 W
    ]

    # Rough per-step VMEM estimate (f32 temporaries + double-buffered I/O + weights).
    in_b = jnp.dtype(x.dtype).itemsize
    out_b = jnp.dtype(out_dtype).itemsize
    R = t_tile + 2 * hp
    vmem_est = ((5 * R + 2 * t_tile) * D * 4
                + 2 * D * (t_tile * in_b + 2 * hp * in_b + t_tile * out_b)
                + 2 * (3 * D * D * 2 + (4 * D + K * D) * 4))
    vmem_limit = int(min(max(2 * vmem_est, 32 * 1024 * 1024), 56 * 1024 * 1024))

    out = pl.pallas_call(
        kern,
        out_shape=jax.ShapeDtypeStruct((B, t_round, D), out_dtype),
        grid_spec=pltpu.PrefetchScalarGridSpec(
            num_scalar_prefetch=0,
            grid=(nt, B),                      # larger-extent axis first (v7x 2-TC)
            in_specs=in_specs,
            out_specs=pl.BlockSpec((None, t_tile, D), lambda t, b: (b, t, 0)),
        ),
        compiler_params=pltpu.CompilerParams(
            dimension_semantics=("parallel", "parallel"),
            vmem_limit_bytes=vmem_limit),
    )(x_in, x_in, x_in, w1, b1, dw_w, dw_b, w2, b2)

    return out[:, :T, :] if t_round != T else out


def _reference(x, params, K, ln_eps=1e-5, bn_eps=1e-5):
    """Pure-JAX f32 reference of the same inference-mode forward."""
    (ln_g, ln_b, w1a, w1b, b1a, b1b, dw_w, dw_b,
     bn_g, bn_b, bn_m, bn_v, w2, b2) = params
    T = x.shape[1]
    pad = (K - 1) // 2
    mu = x.mean(-1, keepdims=True)
    var = ((x - mu) ** 2).mean(-1, keepdims=True)
    h = (x - mu) / jnp.sqrt(var + ln_eps) * ln_g + ln_b
    a = h @ w1a + b1a
    g = h @ w1b + b1b
    glu = a * jax.nn.sigmoid(g)
    padded = jnp.pad(glu, ((0, 0), (pad, pad), (0, 0)))
    dw = sum(padded[:, j:j + T, :] * dw_w[j] for j in range(K)) + dw_b
    bn = (dw - bn_m) / jnp.sqrt(bn_v + bn_eps) * bn_g + bn_b
    act = bn * jax.nn.sigmoid(bn)
    return act @ w2 + b2


if __name__ == "__main__":
    B, T, D, K = 2, 64, 128, 7   # batch, seq len, encoder_dim, depthwise kernel

    key = jax.random.PRNGKey(0)
    ks = jax.random.split(key, 16)

    x = jax.random.normal(ks[0], (B, T, D), jnp.float32)

    # Synthetic parameters (shapes follow the PyTorch module).
    ln_g = 1.0 + 0.1 * jax.random.normal(ks[1], (1, D), jnp.float32)
    ln_b = 0.1 * jax.random.normal(ks[2], (1, D), jnp.float32)
    # PointwiseConv(D, 2D): weight (2D, D, 1) -> split + transposed to two (D, D).
    w1a = jax.random.normal(ks[3], (D, D), jnp.float32) / jnp.sqrt(D)
    w1b = jax.random.normal(ks[4], (D, D), jnp.float32) / jnp.sqrt(D)
    b1a = 0.1 * jax.random.normal(ks[5], (1, D), jnp.float32)
    b1b = 0.1 * jax.random.normal(ks[6], (1, D), jnp.float32)
    # DepthwiseConv(D, D, K): weight (D, 1, K) -> transposed to (K, D).
    dw_w = 0.3 * jax.random.normal(ks[7], (K, D), jnp.float32)
    dw_b = 0.1 * jax.random.normal(ks[8], (1, D), jnp.float32)
    # BatchNorm1d(D): affine + non-trivial running statistics (inference mode).
    bn_g = 1.0 + 0.1 * jax.random.normal(ks[9], (1, D), jnp.float32)
    bn_b = 0.1 * jax.random.normal(ks[10], (1, D), jnp.float32)
    bn_m = 0.1 * jax.random.normal(ks[11], (1, D), jnp.float32)
    bn_v = 0.8 + 0.4 * jax.random.uniform(ks[12], (1, D), jnp.float32)
    # PointwiseConv(D, D): weight (D, D, 1) -> transposed to (D, D).
    w2 = jax.random.normal(ks[13], (D, D), jnp.float32) / jnp.sqrt(D)
    b2 = 0.1 * jax.random.normal(ks[14], (1, D), jnp.float32)

    params = (ln_g, ln_b, w1a, w1b, b1a, b1b, dw_w, dw_b,
              bn_g, bn_b, bn_m, bn_v, w2, b2)

    # t_tile=32 forces multiple time tiles with halos; T divides -> no pad/trim.
    out = conv_module_forward(x, params, kernel_size=K, t_tile=32)
    out = jax.block_until_ready(out)
    ref = _reference(x, params, K)
    assert out.shape == (B, T, D) and out.dtype == x.dtype
    max_err = float(jnp.max(jnp.abs(out - ref)))
    assert jnp.allclose(out, ref, atol=5e-2, rtol=5e-2), max_err

    # bf16 I/O + non-divisible T (padded tail + trimmed output) path.
    T2 = 56
    x16 = x[:, :T2, :].astype(jnp.bfloat16)
    out16 = conv_module_forward(x16, params, kernel_size=K, t_tile=32)
    out16 = jax.block_until_ready(out16)
    ref16 = _reference(x16.astype(jnp.float32), params, K)
    assert out16.shape == (B, T2, D) and out16.dtype == jnp.bfloat16
    max_err16 = float(jnp.max(jnp.abs(out16.astype(jnp.float32) - ref16)))
    assert jnp.allclose(out16.astype(jnp.float32), ref16,
                        atol=1.5e-1, rtol=1.5e-1), max_err16

    print("KERNEL_OK")
</pallas_src>

<mosaic_0001>
module attributes {stable_mosaic.version = 11 : i64} {
  func.func @_conv_module_kernel(%arg0: i32, %arg1: i32, %arg2: memref<1x32x128xf32, #tpu.memory_space<vmem>>, %arg3: memref<1x8x128xf32, #tpu.memory_space<vmem>>, %arg4: memref<1x8x128xf32, #tpu.memory_space<vmem>>, %arg5: memref<128x256xbf16, #tpu.memory_space<vmem>>, %arg6: memref<1x256xf32, #tpu.memory_space<vmem>>, %arg7: memref<7x128xf32, #tpu.memory_space<vmem>>, %arg8: memref<1x128xf32, #tpu.memory_space<vmem>>, %arg9: memref<128x128xbf16, #tpu.memory_space<vmem>>, %arg10: memref<1x128xf32, #tpu.memory_space<vmem>>, %arg11: memref<1x32x128xf32, #tpu.memory_space<vmem>>) attributes {dimension_semantics = [#tpu.dimension_semantics<parallel>, #tpu.dimension_semantics<parallel>], iteration_bounds = array<i64: 2, 2>, scalar_prefetch = 0 : i64, scratch_operands = 0 : i64, tpu.core_type = #tpu.core_type<tc>, window_params = [{transform_indices = @transform_0, window_bounds = array<i64: 1, 32, 128>}, {transform_indices = @transform_1, window_bounds = array<i64: 1, 8, 128>}, {transform_indices = @transform_2, window_bounds = array<i64: 1, 8, 128>}, {pipeline_mode = #tpu.pipeline_mode<synchronous>, transform_indices = @transform_3, window_bounds = array<i64: 128, 256>}, {pipeline_mode = #tpu.pipeline_mode<synchronous>, transform_indices = @transform_4, window_bounds = array<i64: 1, 256>}, {pipeline_mode = #tpu.pipeline_mode<synchronous>, transform_indices = @transform_5, window_bounds = array<i64: 7, 128>}, {pipeline_mode = #tpu.pipeline_mode<synchronous>, transform_indices = @transform_6, window_bounds = array<i64: 1, 128>}, {pipeline_mode = #tpu.pipeline_mode<synchronous>, transform_indices = @transform_7, window_bounds = array<i64: 128, 128>}, {pipeline_mode = #tpu.pipeline_mode<synchronous>, transform_indices = @transform_8, window_bounds = array<i64: 1, 128>}, {transform_indices = @transform_9, window_bounds = array<i64: 1, 32, 128>}]} {
    %c0 = arith.constant 0 : index
    %c0_0 = arith.constant 0 : index
    %c0_1 = arith.constant 0 : index
    %0 = vector.load %arg3[%c0, %c0_0, %c0_1] : memref<1x8x128xf32, #tpu.memory_space<vmem>>, vector<1x8x128xf32>
    %1 = vector.shape_cast %0 : vector<1x8x128xf32> to vector<8x128xf32>
    %c0_2 = arith.constant 0 : index
    %c0_3 = arith.constant 0 : index
    %c0_4 = arith.constant 0 : index
    %2 = vector.load %arg2[%c0_2, %c0_3, %c0_4] : memref<1x32x128xf32, #tpu.memory_space<vmem>>, vector<1x32x128xf32>
    %3 = vector.shape_cast %2 : vector<1x32x128xf32> to vector<32x128xf32>
    %c0_5 = arith.constant 0 : index
    %c0_6 = arith.constant 0 : index
    %c0_7 = arith.constant 0 : index
    %4 = vector.load %arg4[%c0_5, %c0_6, %c0_7] : memref<1x8x128xf32, #tpu.memory_space<vmem>>, vector<1x8x128xf32>
    %5 = vector.shape_cast %4 : vector<1x8x128xf32> to vector<8x128xf32>
    %6 = tpu.concatenate %1, %3, %5 in 0 : vector<8x128xf32>, vector<32x128xf32>, vector<8x128xf32> -> vector<48x128xf32>
    %cst = arith.constant dense<0.000000e+00> : vector<48xf32>
    %7 = vector.multi_reduction <add>, %6, %cst [1] : vector<48x128xf32> to vector<48xf32>
    %8 = vector.shape_cast %7 : vector<48xf32> to vector<48x1xf32>
    %cst_8 = arith.constant 1.280000e+02 : f32
    %9 = vector.broadcast %cst_8 : f32 to vector<48x1xf32>
    %10 = arith.divf %8, %9 : vector<48x1xf32>
    %11 = vector.broadcast %10 : vector<48x1xf32> to vector<48x128xf32>
    %12 = arith.subf %6, %11 : vector<48x128xf32>
    %13 = arith.mulf %12, %12 : vector<48x128xf32>
    %cst_9 = arith.constant dense<0.000000e+00> : vector<48xf32>
    %14 = vector.multi_reduction <add>, %13, %cst_9 [1] : vector<48x128xf32> to vector<48xf32>
    %15 = vector.shape_cast %14 : vector<48xf32> to vector<48x1xf32>
    %cst_10 = arith.constant 1.280000e+02 : f32
    %16 = vector.broadcast %cst_10 : f32 to vector<48x1xf32>
    %17 = arith.divf %15, %16 : vector<48x1xf32>
    %cst_11 = arith.constant 9.99999974E-6 : f32
    %18 = vector.broadcast %cst_11 : f32 to vector<48x1xf32>
    %19 = arith.addf %17, %18 : vector<48x1xf32>
    %20 = math.rsqrt %19 : vector<48x1xf32>
    %21 = vector.broadcast %20 : vector<48x1xf32> to vector<48x128xf32>
    %22 = arith.mulf %12, %21 : vector<48x128xf32>
    %23 = arith.truncf %22 : vector<48x128xf32> to vector<48x128xbf16>
    %c0_12 = arith.constant 0 : index
    %c0_13 = arith.constant 0 : index
    %24 = vector.load %arg5[%c0_12, %c0_13] : memref<128x256xbf16, #tpu.memory_space<vmem>>, vector<128x256xbf16>
    %cst_14 = arith.constant dense<0.000000e+00> : vector<48x256xf32>
    %25 = tpu.matmul %23, %24, %cst_14 {dimension_numbers = #tpu.dot_dimension_numbers<[1], [0], [0], [1], [0, 0, 1, 1], [], []>} : vector<48x128xbf16>, vector<128x256xbf16>, vector<48x256xf32> -> vector<48x256xf32>
    %c0_15 = arith.constant 0 : index
    %c0_16 = arith.constant 0 : index
    %26 = vector.load %arg6[%c0_15, %c0_16] : memref<1x256xf32, #tpu.memory_space<vmem>>, vector<1x256xf32>
    %27 = vector.broadcast %26 : vector<1x256xf32> to vector<48x256xf32>
    %28 = arith.addf %25, %27 : vector<48x256xf32>
    %29 = vector.extract_strided_slice %28 {offsets = [0, 0], sizes = [48, 128], strides = [1, 1]} : vector<48x256xf32> to vector<48x128xf32>
    %30 = vector.extract_strided_slice %28 {offsets = [0, 128], sizes = [48, 128], strides = [1, 1]} : vector<48x256xf32> to vector<48x128xf32>
    %31 = arith.negf %30 : vector<48x128xf32>
    %32 = math.exp %31 : vector<48x128xf32>
    %cst_17 = arith.constant 1.000000e+00 : f32
    %33 = vector.broadcast %cst_17 : f32 to vector<48x128xf32>
    %34 = arith.addf %33, %32 : vector<48x128xf32>
    %35 = arith.divf %33, %34 : vector<48x128xf32>
    %36 = arith.mulf %29, %35 : vector<48x128xf32>
    %37 = tpu.iota {dimensions = array<i32: 0>} : vector<48x1xi32>
    %c32_i32 = arith.constant 32 : i32
    %38 = arith.muli %arg0, %c32_i32 : i32
    %c8_i32 = arith.constant 8 : i32
    %39 = arith.subi %38, %c8_i32 : i32
    %40 = vector.broadcast %39 : i32 to vector<48x1xi32>
    %41 = arith.addi %40, %37 : vector<48x1xi32>
    %c0_i32 = arith.constant 0 : i32
    %42 = vector.broadcast %c0_i32 : i32 to vector<48x1xi32>
    %43 = arith.cmpi sge, %41, %42 : vector<48x1xi32>
    %c64_i32 = arith.constant 64 : i32
    %44 = vector.broadcast %c64_i32 : i32 to vector<48x1xi32>
    %45 = arith.cmpi slt, %41, %44 : vector<48x1xi32>
    %46 = arith.andi %43, %45 : vector<48x1xi1>
    %cst_18 = arith.constant 0.000000e+00 : f32
    %47 = vector.shape_cast %46 : vector<48x1xi1> to vector<48x1xi1>
    %48 = vector.broadcast %47 : vector<48x1xi1> to vector<48x128xi1>
    %49 = vector.broadcast %cst_18 : f32 to vector<48x128xf32>
    %50 = arith.select %48, %36, %49 : vector<48x128xi1>, vector<48x128xf32>
    %c0_19 = arith.constant 0 : index
    %c0_20 = arith.constant 0 : index
    %51 = vector.load %arg7[%c0_19, %c0_20] : memref<7x128xf32, #tpu.memory_space<vmem>>, vector<7x128xf32>
    %cst_21 = arith.constant 0.000000e+00 : f32
    %52 = vector.broadcast %cst_21 : f32 to vector<32x128xf32>
    %53 = vector.extract_strided_slice %50 {offsets = [5, 0], sizes = [32, 128], strides = [1, 1]} : vector<48x128xf32> to vector<32x128xf32>
    %54 = vector.extract_strided_slice %51 {offsets = [0, 0], sizes = [1, 128], strides = [1, 1]} : vector<7x128xf32> to vector<1x128xf32>
    %55 = vector.broadcast %54 : vector<1x128xf32> to vector<32x128xf32>
    %56 = arith.mulf %53, %55 : vector<32x128xf32>
    %57 = arith.addf %52, %56 : vector<32x128xf32>
    %58 = vector.extract_strided_slice %50 {offsets = [6, 0], sizes = [32, 128], strides = [1, 1]} : vector<48x128xf32> to vector<32x128xf32>
    %59 = vector.extract_strided_slice %51 {offsets = [1, 0], sizes = [1, 128], strides = [1, 1]} : vector<7x128xf32> to vector<1x128xf32>
    %60 = vector.broadcast %59 : vector<1x128xf32> to vector<32x128xf32>
    %61 = arith.mulf %58, %60 : vector<32x128xf32>
    %62 = arith.addf %57, %61 : vector<32x128xf32>
    %63 = vector.extract_strided_slice %50 {offsets = [7, 0], sizes = [32, 128], strides = [1, 1]} : vector<48x128xf32> to vector<32x128xf32>
    %64 = vector.extract_strided_slice %51 {offsets = [2, 0], sizes = [1, 128], strides = [1, 1]} : vector<7x128xf32> to vector<1x128xf32>
    %65 = vector.broadcast %64 : vector<1x128xf32> to vector<32x128xf32>
    %66 = arith.mulf %63, %65 : vector<32x128xf32>
    %67 = arith.addf %62, %66 : vector<32x128xf32>
    %68 = vector.extract_strided_slice %50 {offsets = [8, 0], sizes = [32, 128], strides = [1, 1]} : vector<48x128xf32> to vector<32x128xf32>
    %69 = vector.extract_strided_slice %51 {offsets = [3, 0], sizes = [1, 128], strides = [1, 1]} : vector<7x128xf32> to vector<1x128xf32>
    %70 = vector.broadcast %69 : vector<1x128xf32> to vector<32x128xf32>
    %71 = arith.mulf %68, %70 : vector<32x128xf32>
    %72 = arith.addf %67, %71 : vector<32x128xf32>
    %73 = vector.extract_strided_slice %50 {offsets = [9, 0], sizes = [32, 128], strides = [1, 1]} : vector<48x128xf32> to vector<32x128xf32>
    %74 = vector.extract_strided_slice %51 {offsets = [4, 0], sizes = [1, 128], strides = [1, 1]} : vector<7x128xf32> to vector<1x128xf32>
    %75 = vector.broadcast %74 : vector<1x128xf32> to vector<32x128xf32>
    %76 = arith.mulf %73, %75 : vector<32x128xf32>
    %77 = arith.addf %72, %76 : vector<32x128xf32>
    %78 = vector.extract_strided_slice %50 {offsets = [10, 0], sizes = [32, 128], strides = [1, 1]} : vector<48x128xf32> to vector<32x128xf32>
    %79 = vector.extract_strided_slice %51 {offsets = [5, 0], sizes = [1, 128], strides = [1, 1]} : vector<7x128xf32> to vector<1x128xf32>
    %80 = vector.broadcast %79 : vector<1x128xf32> to vector<32x128xf32>
    %81 = arith.mulf %78, %80 : vector<32x128xf32>
    %82 = arith.addf %77, %81 : vector<32x128xf32>
    %83 = vector.extract_strided_slice %50 {offsets = [11, 0], sizes = [32, 128], strides = [1, 1]} : vector<48x128xf32> to vector<32x128xf32>
    %84 = vector.extract_strided_slice %51 {offsets = [6, 0], sizes = [1, 128], strides = [1, 1]} : vector<7x128xf32> to vector<1x128xf32>
    %85 = vector.broadcast %84 : vector<1x128xf32> to vector<32x128xf32>
    %86 = arith.mulf %83, %85 : vector<32x128xf32>
    %87 = arith.addf %82, %86 : vector<32x128xf32>
    %c0_22 = arith.constant 0 : index
    %c0_23 = arith.constant 0 : index
    %88 = vector.load %arg8[%c0_22, %c0_23] : memref<1x128xf32, #tpu.memory_space<vmem>>, vector<1x128xf32>
    %89 = vector.broadcast %88 : vector<1x128xf32> to vector<32x128xf32>
    %90 = arith.addf %87, %89 : vector<32x128xf32>
    %91 = arith.negf %90 : vector<32x128xf32>
    %92 = math.exp %91 : vector<32x128xf32>
    %cst_24 = arith.constant 1.000000e+00 : f32
    %93 = vector.broadcast %cst_24 : f32 to vector<32x128xf32>
    %94 = arith.addf %93, %92 : vector<32x128xf32>
    %95 = arith.divf %93, %94 : vector<32x128xf32>
    %96 = arith.mulf %90, %95 : vector<32x128xf32>
    %97 = arith.truncf %96 : vector<32x128xf32> to vector<32x128xbf16>
    %c0_25 = arith.constant 0 : index
    %c0_26 = arith.constant 0 : index
    %98 = vector.load %arg9[%c0_25, %c0_26] : memref<128x128xbf16, #tpu.memory_space<vmem>>, vector<128x128xbf16>
    %cst_27 = arith.constant dense<0.000000e+00> : vector<32x128xf32>
    %99 = tpu.matmul %97, %98, %cst_27 {dimension_numbers = #tpu.dot_dimension_numbers<[1], [0], [0], [1], [0, 0, 1, 1], [], []>} : vector<32x128xbf16>, vector<128x128xbf16>, vector<32x128xf32> -> vector<32x128xf32>
    %c0_28 = arith.constant 0 : index
    %c0_29 = arith.constant 0 : index
    %100 = vector.load %arg10[%c0_28, %c0_29] : memref<1x128xf32, #tpu.memory_space<vmem>>, vector<1x128xf32>
    %101 = vector.broadcast %100 : vector<1x128xf32> to vector<32x128xf32>
    %102 = arith.addf %99, %101 : vector<32x128xf32>
    %c0_30 = arith.constant 0 : index
    %c0_31 = arith.constant 0 : index
    %c0_32 = arith.constant 0 : index
    %103 = vector.load %arg11[%c0_30, %c0_31, %c0_32] : memref<1x32x128xf32, #tpu.memory_space<vmem>>, vector<1x32x128xf32>
    %104 = vector.shape_cast %103 : vector<1x32x128xf32> to vector<32x128xf32>
    %105 = vector.shape_cast %102 : vector<32x128xf32> to vector<1x32x128xf32>
    tpu.vector_store %arg11[%c0_30, %c0_31, %c0_32], %105 {strides = array<i32>} : memref<1x32x128xf32, #tpu.memory_space<vmem>>, vector<1x32x128xf32>,
    return
  }
  func.func @transform_0(%arg0: i32, %arg1: i32) -> (i32, i32, i32) {
    %c0_i32 = arith.constant 0 : i32
    %c0_i32_0 = arith.constant 0 : i32
    return %arg1, %arg0, %c0_i32 : i32, i32, i32
  }
  func.func @transform_1(%arg0: i32, %arg1: i32) -> (i32, i32, i32) {
    %c4_i32 = arith.constant 4 : i32
    %0 = arith.muli %arg0, %c4_i32 : i32
    %c1_i32 = arith.constant 1 : i32
    %1 = arith.subi %0, %c1_i32 : i32
    %c0_i32 = arith.constant 0 : i32
    %2 = arith.maxsi %1, %c0_i32 : i32
    %c0_i32_0 = arith.constant 0 : i32
    %c0_i32_1 = arith.constant 0 : i32
    return %arg1, %2, %c0_i32_0 : i32, i32, i32
  }
  func.func @transform_2(%arg0: i32, %arg1: i32) -> (i32, i32, i32) {
    %c1_i32 = arith.constant 1 : i32
    %0 = arith.addi %arg0, %c1_i32 : i32
    %c4_i32 = arith.constant 4 : i32
    %1 = arith.muli %0, %c4_i32 : i32
    %c7_i32 = arith.constant 7 : i32
    %2 = arith.minsi %1, %c7_i32 : i32
    %c0_i32 = arith.constant 0 : i32
    %c0_i32_0 = arith.constant 0 : i32
    return %arg1, %2, %c0_i32 : i32, i32, i32
  }
  func.func @transform_3(%arg0: i32, %arg1: i32) -> (i32, i32) {
    %c0_i32 = arith.constant 0 : i32
    %c0_i32_0 = arith.constant 0 : i32
    %c0_i32_1 = arith.constant 0 : i32
    return %c0_i32, %c0_i32_0 : i32, i32
  }
  func.func @transform_4(%arg0: i32, %arg1: i32) -> (i32, i32) {
    %c0_i32 = arith.constant 0 : i32
    %c0_i32_0 = arith.constant 0 : i32
    %c0_i32_1 = arith.constant 0 : i32
    return %c0_i32, %c0_i32_0 : i32, i32
  }
  func.func @transform_5(%arg0: i32, %arg1: i32) -> (i32, i32) {
    %c0_i32 = arith.constant 0 : i32
    %c0_i32_0 = arith.constant 0 : i32
    %c0_i32_1 = arith.constant 0 : i32
    return %c0_i32, %c0_i32_0 : i32, i32
  }
  func.func @transform_6(%arg0: i32, %arg1: i32) -> (i32, i32) {
    %c0_i32 = arith.constant 0 : i32
    %c0_i32_0 = arith.constant 0 : i32
    %c0_i32_1 = arith.constant 0 : i32
    return %c0_i32, %c0_i32_0 : i32, i32
  }
  func.func @transform_7(%arg0: i32, %arg1: i32) -> (i32, i32) {
    %c0_i32 = arith.constant 0 : i32
    %c0_i32_0 = arith.constant 0 : i32
    %c0_i32_1 = arith.constant 0 : i32
    return %c0_i32, %c0_i32_0 : i32, i32
  }
  func.func @transform_8(%arg0: i32, %arg1: i32) -> (i32, i32) {
    %c0_i32 = arith.constant 0 : i32
    %c0_i32_0 = arith.constant 0 : i32
    %c0_i32_1 = arith.constant 0 : i32
    return %c0_i32, %c0_i32_0 : i32, i32
  }
  func.func @transform_9(%arg0: i32, %arg1: i32) -> (i32, i32, i32) {
    %c0_i32 = arith.constant 0 : i32
    %c0_i32_0 = arith.constant 0 : i32
    return %arg1, %arg0, %c0_i32 : i32, i32, i32
  }
}

</mosaic_0001>

<bundles_post_ra>
// kernel: tpu_custom_call.1
= control target key start
LH: loop header
LB: loop body
LE: loop exit
PB: predicated region body
PF: predicated region fallthrough
CT: control target
= control target key end

     0   :  { %s2943_s0 = inlined_call_operand.hbm [shape: f32[2,64,128], index: 0, kind: input, shape index: {}]   ;;  %s2944_s1 = inlined_call_operand.hbm [shape: f32[2,64,128], index: 1, kind: input, shape index: {}]   ;;  %s2945_s2 = inlined_call_operand.hbm [shape: f32[2,64,128], index: 2, kind: input, shape index: {}]   ;;  %s2946_s3 = inlined_call_operand.hbm [shape: bf16[128,256], index: 3, kind: input, shape index: {}]   ;;  %s2947_s4 = inlined_call_operand.vmem [shape: f32[1,256], index: 4, kind: input, shape index: {}]   ;;  %s2948_s5 = inlined_call_operand.vmem [shape: f32[7,128], index: 5, kind: input, shape index: {}]   ;;  %s2949_s6 = inlined_call_operand.vmem [shape: f32[1,128], index: 6, kind: input, shape index: {}]   ;;  %s2950_s7 = inlined_call_operand.hbm [shape: bf16[128,128], index: 7, kind: input, shape index: {}]   ;;  %s2951_s8 = inlined_call_operand.vmem [shape: f32[1,128], index: 8, kind: input, shape index: {}]   ;;  %s2952_s9 = inlined_call_operand.hbm [shape: f32[2,64,128], index: 9, kind: output, shape index: {}]  }
   0x1   :  { %2979 = sst [smem:[#allocation32_spill]] %s2943_s0 }
   0x2   :  { %2980 = sst [smem:[#allocation33_spill]] %s2944_s1 }
   0x3   :  { %2981 = sst [smem:[#allocation34_spill]] %s2945_s2 }
   0x4   :  { %2982 = sst [smem:[#allocation35_spill]] %s2946_s3 }
   0x5   :  { %2983 = sst [smem:[#allocation36_spill]] %s2947_s4 }
   0x6   :  { %2984 = sst [smem:[#allocation37_spill]] %s2948_s5 }
   0x7   :  { %2985 = sst [smem:[#allocation38_spill]] %s2949_s6 }
   0x8   :  { %2986 = sst [smem:[#allocation39_spill]] %s2950_s7 }
   0x9   :  { %2987 = sst [smem:[#allocation40_spill]] %s2951_s8 }
   0xa   :  { %2988 = sst [smem:[#allocation41_spill]] %s2952_s9 }
   0xb   :  { %14 = vsyncpa [#allocation3], 0 }
   0xc   :  { %16 = vsyncpa [#allocation3 + $0x1], 0 }
   0xd   :  { %17 = vsyncpa [#allocation6], 0 }
   0xe   :  { %19 = vsyncpa [#allocation6 + $0x1], 0 }
   0xf   :  { %20 = vsyncpa [#allocation9], 0 }
  0x10   :  { %21 = vsyncpa [#allocation4], 0 }
  0x11   :  { %23 = vsyncpa [#allocation4 + $0x1], 0  ;;  %s2177_s30 = smov 0   ;;  %s2179_s10 = smov 0  }
  0x12   :  { %s2181_s11 = smov 0   ;;  %s2183_s12 = smov 0  }
  0x13   :  { %s2185_s13 = smov 0   ;;  %s2187_s14 = smov 0  }
  0x14   :  { %s2189_s15 = smov 0   ;;  %s2191_s16 = smov 0  }
  0x15   :  { %s2193_s17 = smov 0   ;;  %s2195_s18 = smov 0  }
  0x16   :  { %s2197_s19 = smov 0   ;;  %s2199_s20 = smov 0  }
  0x17   :  { %s2201_s21 = smov 0   ;;  %s2203_s22 = smov 0  }
  0x18 LB: > { %2989 = sst [smem:[#allocation17_spill]] %s2060_s30  ;;  %s2248_s23 = sadd.s32 4294967295, %s2112_s22   ;;  %s2112_s22 = sphi %s2203_s22, %s29_s22   ;;  %s2108_s21 = sphi %s2201_s21, %s3074_s21   ;;  %s2104_s20 = sphi %s2199_s20, %s3073_s20   ;;  %s2100_s19 = sphi %s2197_s19, %s3072_s19   ;;  %s2096_s18 = sphi %s2195_s18, %s3071_s18   ;;  %s2092_s17 = sphi %s2193_s17, %s3070_s17   ;;  %s2088_s16 = sphi %s2191_s16, %s3079_s16   ;;  %s2084_s15 = sphi %s2189_s15, %s3078_s15   ;;  %s2080_s14 = sphi %s2187_s14, %s3077_s14   ;;  %s2076_s13 = sphi %s2185_s13, %s3076_s13   ;;  %s2072_s12 = sphi %s2183_s12, %s3067_s12   ;;  %s2068_s11 = sphi %s2181_s11, %s3075_s11   ;;  %s2064_s10 = sphi %s2179_s10, %s3066_s10   ;;  %s2060_s30 = sphi %s2177_s30, %s3065_s30  }
  0x19   : > { %2990 = sst [smem:[#allocation18_spill]] %s2064_s10  ;;  %p1451_p0 = scmp.ge.s32.totalorder %s2112_s22, 1 }
  0x1a   : > { %2991 = sst [smem:[#allocation19_spill]] %s2068_s11  ;;  %p2954_p1 = scmp.eq.s32.totalorder %s2248_s23, 0 }
  0x1b   : > { %2992 = sst [smem:[#allocation20_spill]] %s2076_s13  ;;  %p300_p3 = scmp.lt.s32.totalorder %s2112_s22, 5 }
  0x1c   : > { %2993 = sst [smem:[#allocation21_spill]] %s2092_s17  ;;  %s2114_s25 = smov [#allocation8]  }
  0x1d   : > { %2994 = sst [smem:[#allocation22_spill]] %s2096_s18  ;;  %p2254_p4 = pnand %p1451_p0, %p300_p3 }
  0x1e   : > { %2995 = sst [smem:[#allocation23_spill]] %s2100_s19  ;;  %s312_s26 = sshll.u32 %s2114_s25, 4  ;;  %s313_s26 = int_to_ptr.vmem [resolvable:$true] %s312_s26 }
  0x1f   : > { %2996 = sst [smem:[#allocation24_spill]] %s2104_s20  ;;  %p1572_p5 = pneg %p2254_p4 }
  0x20   : > { %2997 = sst [smem:[#allocation25_spill]] %s2108_s21  ;;  %s3001_s3 = sld [smem:[#allocation35_spill]] }
  0x21   : > { %s2998_s24 = scalar_select %p2254_p4, 1, 0 }
  0x22   : > { %p2262_p6 = pnand %p1572_p5, %p2954_p1 }
  0x23   : > { %2999 = sst [smem:[#allocation26_spill]] %s2998_s24 }
  0x24   : > { %p2972_p8 = pneg %p2262_p6 }
  0x26   : > { %s1808_s9 = scalar_lea.hbm %s3001_s3, 2048 }
  0x27   : > { %p1809_p7 = scmp.ne.s32.totalorder %s3001_s3, %s1808_s9  ;;  %p1815_p11 = scmp.lt.u32.totalorder %s1808_s9, %s3001_s3 }
  0x29   : > { %p1811_p9 = pnand %p2972_p8, %p1809_p7 }
  0x2b   : > { %p1812_p10 = pneg %p1811_p9 }
  0x2d   : > { %p1817_p12 = pnand %p1815_p11, %p1812_p10 }
  0x2f   : > { %1820 = shalt.err (!%p1817_p12)
}
  0x30   : > { %s1821_s28 = scalar_lea.vmem %s313_s26, 2048  ;;  %p1829_p5 = scmp.lt.s32.totalorder %s313_s26, %s313_s26 }
  0x31   : > { %p1822_p13 = scmp.ne.s32.totalorder %s313_s26, %s1821_s28  ;;  %p1830_p2 = scmp.lt.s32.totalorder %s1821_s28, %s1821_s28 }
  0x33   : > { %p1824_p0 = pnand %p1822_p13, %p2972_p8  ;;  %p1831_p1 = por %p1830_p2, %p1829_p5 }
  0x35   : > { %p1825_p3 = pneg %p1824_p0 }
  0x37   : > { %p1832_p4 = pnand %p1831_p1, %p1825_p3 }
  0x39   : > { %1835 = shalt.err (!%p1832_p4)
}
  0x3a   : > { %s2956_s8 = smov 128   ;;  %s2957_s6 = smov 8  }
  0x3b   : > { %1575 = dma.hbm_to_vmem [thread:$0]  (!%p2262_p6), %s3001_s3, 2048, %s313_s26, [#allocation9], %s2956_s8, %s2956_s8, %s2957_s6  }
  0x3c   : > { %s38_s29 = sadd.s32 1, %s2104_s20  ;;  %s41_s25 = sadd.s32 1, %s2108_s21 }
  0x3d   : > { %p39_p1 = scmp.ge.s32.totalorder %s38_s29, 2  ;;  %p2971_p2 = scmp.eq.s32.totalorder %s2112_s22, 0 }
  0x3e   : > { %s2295_s28 = sshll.u32 %s2108_s21, 2  ;;  %p93_p9 = scmp.ne.s32.totalorder %s2080_s14, %s2076_s13 }
  0x3f   : > { %s3081_s29 = smov (%p39_p1, %s38_s29), 0  ;;  %s3083_s25 = smov (!%p39_p1, %s41_s25), %s2108_s21 }
  0x40   : > { %3002 = sst [smem:[#allocation27_spill]] %s3081_s29  ;;  %s2303_s4 = ssub.s32 %s2104_s20, %s3081_s29 }
  0x41   : > { %s1446_s9 = sadd.s32 4294967295, %s2295_s28  ;;  %p43_p4 = scmp.ge.s32.totalorder %s3083_s25, 2 }
  0x42   : > { %p75_p7 = scmp.gt.s32.totalorder %s1446_s9, 0  ;;  %p99_p10 = scmp.ne.s32.totalorder %s2076_s13, %s2072_s12 }
  0x43   : > { %s3085_s25 = smov (%p43_p4, %s3083_s25), 0  ;;  %p2321_p13 = por %p93_p9, %p2971_p2 }
  0x44   : > { %3003 = sst [smem:[#allocation28_spill]] %s3085_s25  ;;  %s3087_s9 = smov (!%p75_p7, %s1446_s9), 0 }
  0x45   : > { %s46_s26 = ssub.s32 %s2108_s21, %s3085_s25  ;;  %s1447_s18 = sshll.u32 %s3085_s25, 2 }
  0x46   : > { %s2316_s8 = sor.u32 %s46_s26, %s2303_s4  ;;  %s1448_s6 = sadd.s32 4294967295, %s1447_s18 }
  0x47   : > { %p79_p12 = scmp.gt.s32.totalorder %s1448_s6, 0  ;;  %p3005_p0 = scmp.eq.s32.totalorder %s2248_s23, 0 }
  0x48   : > { %s2331_s26 = sadd.s32 4, %s1447_s18  ;;  %p2970_p5 = scmp.lt.s32.totalorder %s2112_s22, 4 }
  0x49   : > { %p2327_p3 = por %p99_p10, %p3005_p0  ;;  %s3089_s6 = smov (!%p79_p12, %s1448_s6), 0 }
  0x4a   : > { %s82_s3 = ssub.s32 %s3087_s9, %s3089_s6  ;;  %s2337_s29 = sshll.u32 %s2104_s20, 3 }
  0x4b   : > { %s3006_s5 = scalar_select %p2327_p3, 1, 0 }
  0x4c   : > { %s83_s25 = sor.u32 %s82_s3, %s2303_s4  ;;  %s361_s21 = sadd.s32 %s2337_s29, %s2295_s28 }
  0x4d   : > { %3007 = sst [smem:[#allocation29_spill]] %s3006_s5  ;;  %p84_p4 = scmp.eq.s32.totalorder %s83_s25, 0 }
  0x4e   : > { %s374_s19 = sand.u32 1, %s2112_s22   ;;  %s376_s13 = sand.u32 1, %s2080_s14  }
  0x4f   : > { %s3008_s24 = sadd.s32 1, %s2080_s14  ;;  %s1459_s18 = sshll.u32 %s376_s13, 3 }
  0x50   : > { %s2346_s5 = scalar_select %p84_p4, %s2080_s14, %s3008_s24  }
  0x51   : > { %s387_s2 = sadd.s32 %s2337_s29, %s3087_s9  ;;  %s378_s10 = scalar_lea.vmem [#allocation5], %s1459_s18 }
  0x52   : > { %3009 = sst [smem:[#allocation30_spill]] %s2346_s5  ;;  %s1463_s30 = sshll.u32 %s387_s2, 7 }
  0x53   : > { %s391_s6 = sshll.u32 %s378_s10, 4  ;;  %s3010_s1 = sld [smem:[#allocation33_spill]]  ;;  %s2354_s6 = int_to_ptr.vmem [resolvable:$true] %s391_s6 }
  0x54   : > { %p2360_p7 = pnand %p2970_p5, %p2321_p13  ;;  %s2117_s2 = smov [#allocation10]  }
  0x55   : > { %s334_s10 = sshll.u32 %s2117_s2, 4  ;;  %s2366_s0 = scalar_lea.sflag [#allocation6], %s374_s19  ;;  %s2364_s10 = int_to_ptr.vmem [resolvable:$true] %s334_s10 }
  0x56   : > { %p1838_p10 = pneg %p2360_p7 }
  0x59   : > { %s2352_s3 = scalar_lea.hbm %s3010_s1, %s1463_s30  ;;  %s1841_s25 = scalar_lea.hbm %s3010_s1, 2048 }
  0x5a   : > { %s1836_s30 = scalar_lea.hbm %s2352_s3, 128  ;;  %p1842_p13 = scmp.lt.u32.totalorder %s2352_s3, %s3010_s1 }
  0x5b   : > { %p1837_p9 = scmp.ne.s32.totalorder %s2352_s3, %s1836_s30  ;;  %p1843_p4 = scmp.lt.u32.totalorder %s1841_s25, %s1836_s30 }
  0x5c   : > { %p1845_p5 = scmp.lt.u32.totalorder %s1836_s30, %s2352_s3 }
  0x5d   : > { %p1839_p12 = pnand %p1838_p10, %p1837_p9  ;;  %p1844_p1 = por %p1843_p4, %p1842_p13 }
  0x5f   : > { %p1840_p0 = pneg %p1839_p12  ;;  %p1846_p2 = por %p1845_p5, %p1844_p1 }
  0x61   : > { %p1847_p11 = pnand %p1846_p2, %p1840_p0 }
  0x63   : > { %1850 = shalt.err (!%p1847_p11)
}
  0x64   : > { %s1851_s19 = scalar_lea.vmem %s2354_s6, 128  ;;  %s2118_s18 = smov [#allocation5]  }
  0x65   : > { %p1852_p9 = scmp.ne.s32.totalorder %s2354_s6, %s1851_s19  ;;  %s1856_s2 = sshll.u32 %s2118_s18, 4  ;;  %s1857_s2 = int_to_ptr.vmem [resolvable:$false] %s1856_s2 }
  0x66   : > { %s1858_s11 = scalar_lea.vmem %s1857_s2, 256  ;;  %p1859_p3 = scmp.lt.s32.totalorder %s2354_s6, %s1857_s2 }
  0x67   : > { %p1854_p12 = pnand %p1852_p9, %p1838_p10  ;;  %p1860_p13 = scmp.lt.s32.totalorder %s1858_s11, %s1851_s19 }
  0x69   : > { %p1855_p8 = pneg %p1854_p12  ;;  %p1861_p4 = por %p1860_p13, %p1859_p3 }
  0x6b   : > { %p1862_p5 = pnand %p1861_p4, %p1855_p8 }
  0x6d   : > { %1865 = shalt.err (!%p1862_p5)
}
  0x6e   : > { %1585 = dma.hbm_to_vmem [thread:$0]  (!%p2360_p7), %s2352_s3, 128, %s2354_s6, %s2366_s0  }
  0x6f   : > { %s3012_s7 = sld [smem:[#allocation39_spill]]  ;;  %p3013_p11 = pneg %p2262_p6 }
  0x75   : > { %s1866_s25 = scalar_lea.hbm %s3012_s7, 1024 }
  0x76   : > { %p1867_p2 = scmp.ne.s32.totalorder %s3012_s7, %s1866_s25  ;;  %p1873_p1 = scmp.lt.u32.totalorder %s1866_s25, %s3012_s7 }
  0x78   : > { %p1869_p3 = pnand %p1867_p2, %p3013_p11 }
  0x7a   : > { %p1870_p8 = pneg %p1869_p3 }
  0x7c   : > { %p1875_p10 = pnand %p1873_p1, %p1870_p8 }
  0x7e   : > { %1878 = shalt.err (!%p1875_p10)
}
  0x7f   : > { %s1879_s6 = scalar_lea.vmem %s2364_s10, 1024  ;;  %p3014_p0 = pmov %p3013_p11 }
  0x80   : > { %p1880_p7 = scmp.ne.s32.totalorder %s2364_s10, %s1879_s6  ;;  %p1887_p13 = scmp.lt.s32.totalorder %s2364_s10, %s2364_s10 }
  0x81   : > { %p1888_p4 = scmp.lt.s32.totalorder %s1879_s6, %s1879_s6 }
  0x82   : > { %p1882_p9 = pnand %p1880_p7, %p3014_p0 }
  0x83   : > { %p1889_p5 = por %p1888_p4, %p1887_p13 }
  0x84   : > { %p1883_p12 = pneg %p1882_p9 }
  0x86   : > { %p1890_p2 = pnand %p1889_p5, %p1883_p12 }
  0x88   : > { %1893 = shalt.err (!%p1890_p2)
}
  0x89   : > { %s2119_s3 = smov 64   ;;  %s2120_s24 = smov 4  }
  0x8a   : > { %1578 = dma.hbm_to_vmem [thread:$0]  (!%p2262_p6), %s3012_s7, 1024, %s2364_s10, [#allocation9], %s2119_s3, %s2119_s3, %s2120_s24  }
  0x8b   : > { %s1444_s30 = sadd.s32 4294967294, %s2112_s22   ;;  %s50_s13 = sadd.s32 1, %s2092_s17 }
  0x8c   : > { %p57_p11 = scmp.ne.s32.totalorder %s2092_s17, %s2088_s16  ;;  %p3015_p3 = scmp.eq.s32.totalorder %s2316_s8, 0 }
  0x8d   : > { %p3017_p8 = scmp.eq.s32.totalorder %s2112_s22, 0  ;;  %p63_p10 = scmp.ne.s32.totalorder %s2088_s16, %s2084_s15 }
  0x8e   : > { %s2426_s25 = scalar_select %p3015_p3, %s2092_s17, %s50_s13  }
  0x8f   : > { %p59_p1 = por %p3017_p8, %p57_p11  ;;  %p3018_p7 = scmp.eq.s32.totalorder %s2248_s23, 3 }
  0x90   : > { %3016 = sst [smem:[#allocation31_spill]] %s2426_s25  ;;  %p293_p9 = scmp.eq.s32.totalorder %s1444_s30, 3 }
  0x91   : > { %p2434_p0 = por %p3018_p7, %p57_p11  ;;  %p3020_p12 = scmp.eq.s32.totalorder %s2248_s23, 0 }
  0x92   : > { %s351_s10 = sand.u32 1, %s2092_s17   ;;  %p2445_p6 = por %p293_p9, %p63_p10 }
  0x93   : > { %s3019_s9 = scalar_select %p2434_p0, 1, 0 }
  0x94   : > { %p2440_p13 = por %p3020_p12, %p63_p10  ;;  %s1455_s8 = sshll.u32 %s351_s10, 5 }
  0x95   : > { %s3022_s12 = scalar_select %p2445_p6, 1, 0 }
  0x96   : > { %s1458_s19 = sshll.u32 %s361_s21, 7  ;;  %s3023_s3 = sld [smem:[#allocation32_spill]] }
  0x97   : > { %s355_s2 = scalar_lea.vmem [#allocation2], %s1455_s8  ;;  %p3024_p4 = scmp.lt.s32.totalorder %s2112_s22, 4 }
  0x98   : > { %s364_s11 = sshll.u32 %s355_s2, 4  ;;  %s2465_s21 = scalar_lea.sflag [#allocation3], %s351_s10  ;;  %s2463_s11 = int_to_ptr.vmem [resolvable:$true] %s364_s11 }
  0x99   : > { %p2459_p5 = pnand %p3024_p4, %p59_p1 }
  0x9b   : > { %p1896_p11 = pneg %p2459_p5 }
  0x9c   : > { %s2455_s24 = scalar_lea.hbm %s3023_s3, %s1458_s19  ;;  %s1899_s18 = scalar_lea.hbm %s3023_s3, 2048 }
  0x9d   : > { %s1894_s13 = scalar_lea.hbm %s2455_s24, 512  ;;  %p1900_p1 = scmp.lt.u32.totalorder %s2455_s24, %s3023_s3 }
  0x9e   : > { %p1895_p2 = scmp.ne.s32.totalorder %s2455_s24, %s1894_s13  ;;  %p1901_p10 = scmp.lt.u32.totalorder %s1899_s18, %s1894_s13 }
  0x9f   : > { %p1903_p9 = scmp.lt.u32.totalorder %s1894_s13, %s2455_s24 }
  0xa0   : > { %p1897_p3 = pnand %p1896_p11, %p1895_p2  ;;  %p1902_p7 = por %p1901_p10, %p1900_p1 }
  0xa2   : > { %p1898_p8 = pneg %p1897_p3  ;;  %p1904_p12 = por %p1903_p9, %p1902_p7 }
  0xa4   : > { %p1905_p4 = pnand %p1904_p12, %p1898_p8 }
  0xa6   : > { %1908 = shalt.err (!%p1905_p4)
}
  0xa7   : > { %s1909_s10 = scalar_lea.vmem %s2463_s11, 512  ;;  %s2121_s8 = smov [#allocation2]  }
  0xa8   : > { %p1910_p2 = scmp.ne.s32.totalorder %s2463_s11, %s1909_s10  ;;  %s1914_s19 = sshll.u32 %s2121_s8, 4  ;;  %s1915_s19 = int_to_ptr.vmem [resolvable:$false] %s1914_s19 }
  0xa9   : > { %s1916_s6 = scalar_lea.vmem %s1915_s19, 1024  ;;  %p1917_p0 = scmp.lt.s32.totalorder %s2463_s11, %s1915_s19 }
  0xaa   : > { %p1912_p3 = pnand %p1910_p2, %p1896_p11  ;;  %p1918_p1 = scmp.lt.s32.totalorder %s1916_s6, %s1909_s10 }
  0xac   : > { %p1913_p6 = pneg %p1912_p3  ;;  %p1919_p10 = por %p1918_p1, %p1917_p0 }
  0xae   : > { %p1920_p7 = pnand %p1919_p10, %p1913_p6 }
  0xb0   : > { %1923 = shalt.err (!%p1920_p7)
}
  0xb1   : > { %s3026_s13 = smov 8   ;;  %s3027_s18 = smov 128  }
  0xb2   : > { %s3028_s2 = sld [smem:[#allocation19_spill]]  ;;  %s3029_s1 = sld [smem:[#allocation18_spill]] }
  0xb3   : > { %s3030_s8 = sld [smem:[#allocation17_spill]]  ;;  %s1521_s30 = sadd.s32 4, %s2295_s28 }
  0xb4   : > { %1582 = dma.hbm_to_vmem [thread:$0]  (!%p2459_p5), %s2455_s24, 512, %s2463_s11, %s2465_s21, %s3027_s18, %s3027_s18, %s3026_s13  }
  0xb5   : > { %p111_p0 = scmp.lt.s32.totalorder %s1521_s30, 7  ;;  %p3031_p11 = scmp.lt.s32.totalorder %s2331_s26, 7 }
  0xb6   : > { %p3032_p8 = scmp.eq.s32.totalorder %s2112_s22, 0  ;;  %p3034_p5 = scmp.eq.s32.totalorder %s2248_s23, 0 }
  0xb7   : > { %s3091_s26 = smov (!%p3031_p11, %s2331_s26), 7  ;;  %s3093_s30 = smov (!%p111_p0, %s1521_s30), 7 }
  0xb8   : > { %s122_s10 = sadd.s32 1, %s3028_s2  ;;  %p129_p6 = scmp.ne.s32.totalorder %s3028_s2, %s3029_s1 }
  0xb9   : > { %p135_p12 = scmp.ne.s32.totalorder %s3029_s1, %s3030_s8  ;;  %s118_s6 = ssub.s32 %s3093_s30, %s3091_s26 }
  0xba   : > { %p2505_p9 = por %p129_p6, %p3032_p8  ;;  %s400_s3 = sand.u32 1, %s3028_s2  }
  0xbb   : > { %s119_s7 = sor.u32 %s118_s6, %s2303_s4  ;;  %p2515_p4 = por %p135_p12, %p3034_p5 }
  0xbc   : > { %p120_p2 = scmp.eq.s32.totalorder %s119_s7, 0  ;;  %s1464_s24 = sshll.u32 %s400_s3, 3 }
  0xbd   : > { %s3035_s28 = scalar_select %p2515_p4, 1, 0 }
  0xbe   : > { %s411_s11 = sadd.s32 %s2337_s29, %s3093_s30  ;;  %s3095_s2 = smov (!%p120_p2, %s3028_s2), %s122_s10 }
  0xbf   : > { %s1467_s21 = sshll.u32 %s411_s11, 7  ;;  %s402_s13 = scalar_lea.vmem [#allocation7], %s1464_s24 }
  0xc0   : > { %s415_s18 = sshll.u32 %s402_s13, 4  ;;  %s3036_s17 = sld [smem:[#allocation34_spill]]  ;;  %s2528_s18 = int_to_ptr.vmem [resolvable:$true] %s415_s18 }
  0xc1   : > { %p3038_p3 = scmp.lt.s32.totalorder %s2112_s22, 4 }
  0xc3   : > { %p2534_p1 = pnand %p3038_p3, %p2505_p9 }
  0xc5   : > { %p1926_p7 = pneg %p2534_p1 }
  0xc6   : > { %s3037_s5 = smov %s3036_s17  ;;  %s2526_s1 = scalar_lea.hbm %s3036_s17, %s1467_s21 }
  0xc7   : > { %s1924_s7 = scalar_lea.hbm %s2526_s1, 128  ;;  %s1929_s29 = scalar_lea.hbm %s3037_s5, 2048 }
  0xc8   : > { %p1925_p10 = scmp.ne.s32.totalorder %s2526_s1, %s1924_s7  ;;  %p1930_p11 = scmp.lt.u32.totalorder %s2526_s1, %s3037_s5 }
  0xc9   : > { %p1931_p8 = scmp.lt.u32.totalorder %s1929_s29, %s1924_s7  ;;  %p1933_p12 = scmp.lt.u32.totalorder %s1924_s7, %s2526_s1 }
  0xca   : > { %p1927_p0 = pnand %p1926_p7, %p1925_p10 }
  0xcb   : > { %p1932_p9 = por %p1931_p8, %p1930_p11 }
  0xcc   : > { %p1928_p6 = pneg %p1927_p0 }
  0xcd   : > { %p1934_p5 = por %p1933_p12, %p1932_p9 }
  0xcf   : > { %p1935_p2 = pnand %p1934_p5, %p1928_p6 }
  0xd1   : > { %1938 = shalt.err (!%p1935_p2)
}
  0xd2   : > { %s1939_s3 = scalar_lea.vmem %s2528_s18, 128  ;;  %s2122_s8 = smov [#allocation7]  }
  0xd3   : > { %p1940_p3 = scmp.ne.s32.totalorder %s2528_s18, %s1939_s3  ;;  %s1944_s30 = sshll.u32 %s2122_s8, 4  ;;  %s1945_s30 = int_to_ptr.vmem [resolvable:$false] %s1944_s30 }
  0xd4   : > { %s1946_s10 = scalar_lea.vmem %s1945_s30, 256  ;;  %p1947_p4 = scmp.lt.s32.totalorder %s2528_s18, %s1945_s30 }
  0xd5   : > { %p1942_p10 = pnand %p1940_p3, %p1926_p7  ;;  %p1948_p11 = scmp.lt.s32.totalorder %s1946_s10, %s1939_s3 }
  0xd7   : > { %p1943_p0 = pneg %p1942_p10  ;;  %p1949_p8 = por %p1948_p11, %p1947_p4 }
  0xd9   : > { %p1950_p9 = pnand %p1949_p8, %p1943_p0 }
  0xdb   : > { %1953 = shalt.err (!%p1950_p9)
}
  0xdc   : > { %1588 = dma.hbm_to_vmem [thread:$0]  (!%p2534_p1), %s2526_s1, 128, %s2528_s18, %s2366_s0  }
  0xdd   : > { %s3040_s19 = sld [smem:[#allocation26_spill]] }
  0xe3   : > { %p3041_p6 = scmp.ne.s32.totalorder %s3040_s19, 0 }
  0xe4   : > { %s2567_s6 = sand.u32 (!%p3041_p6), 1, %s2088_s16  }
  0xe5   : > { %424 = sbr.rel (%p3041_p6) target bundleno = 1134 (0x46e), region = 56  ;;  %s1469_s24 = sshll.u32 (!%p3041_p6), %s2567_s6, 5 }
  0xe6   : > { %s427_s11 = scalar_lea.sflag (!%p3041_p6), [#allocation3], %s2567_s6  ;;  %s430_s21 = scalar_lea.vmem (!%p3041_p6), [#allocation2], %s1469_s24 }
  0xec   : > { %2039 = dma.done.wait (%p2440_p13), %s427_s11, 512  }
  0xed   : > { %2041 = vsyncadd (%p2440_p13), %s427_s11, 4294966784  ;;  %s3042_s0 = sld [smem:[#allocation20_spill]]  ;;  %s3043_s13 = sld [smem:[#allocation29_spill]] }
  0xee   : > { %s435_s18 = sand.u32 1, %s2248_s23  }
  0xef   : > { %s436_s7 = scalar_lea.sflag [#allocation6], %s435_s18 }
  0xf3   : > { %s437_s1 = sand.u32 1, %s3042_s0   ;;  %p3044_p4 = scmp.ne.s32.totalorder %s3043_s13, 0 }
  0xf4   : > { %s1470_s4 = sshll.u32 %s437_s1, 3 }
  0xf5   : > { %s439_s17 = scalar_lea.vmem [#allocation5], %s1470_s4 }
  0xf6   : > { %2043 = dma.done.wait (%p3044_p4), %s436_s7, 128  }
  0xf7   : > { %2045 = vsyncadd (%p3044_p4), %s436_s7, 4294967168  ;;  %s3045_s20 = sld [smem:[#allocation18_spill]]  ;;  %p3046_p1 = scmp.ne.s32.totalorder %s3035_s28, 0 }
  0xfd   : > { %s446_s29 = sand.u32 1, %s3045_s20  }
  0xfe   : > { %s1471_s26 = sshll.u32 %s446_s29, 3 }
  0xff   : > { %s448_s25 = scalar_lea.vmem [#allocation7], %s1471_s26 }
 0x100   : > { %2047 = dma.done.wait (%p3046_p1), %s436_s7, 128  }
 0x101   : > { %2049 = vsyncadd (%p3046_p1), %s436_s7, 4294967168  ;;  %p3047_p13 = scmp.eq.s32.totalorder %s2248_s23, 0 }
 0x103   : > { %2051 = dma.done.wait (%p3047_p13), [#allocation9], 3072   ;;  %p3048_p7 = pmov %p3047_p13 }
 0x104   : > { %v512_v0 = vld [vmem:[%s439_s17] sm:$0xff]  ;;  %v515_v3 = vld [vmem:[%s430_s21 + $0x10] sm:$0xff]  ;;  %v516_v4 = vld [vmem:[%s430_s21 + $0x18] sm:$0xff]  ;;  %v2123_v46 = vmov 0   ;;  %s3049_s23 = sld [smem:[#allocation23_spill]]  ;;  %s3050_s3 = sld [smem:[#allocation36_spill]] }
 0x105   : > { %2053 = vsyncadd (%p3048_p7), [#allocation9], 4294964224  ;;  %v514_v1 = vld [vmem:[%s430_s21 + $0x8] sm:$0xff]  ;;  %518 = vadd.xlane.f32.xlu0 %v512_v0  ;;  %v513_v2 = vld [vmem:[%s430_s21] sm:$0xff]  ;;  %728 = vmatprep.mubr.bf16.mxu0 %v2123_v46  ;;  %s3051_s11 = sld [smem:[#allocation37_spill]]  ;;  %vm882_vm10 = vcmask 1046528  }
 0x106   : > { %522 = vadd.xlane.f32.xlu1 %v514_v1  ;;  %v517_v5 = vld [vmem:[%s448_s25] sm:$0xff]  ;;  %v1720_v6 = vld [vmem:[#allocation8 + $0x4] ss:$8 sps:$4 sm:$0xff]   ;;  %v1722_v7 = vld [vmem:[#allocation8] ss:$8 sps:$4 sm:$0xff]   ;;  %vm916_vm11 = vcmask 1045504  }
 0x107   : > { %v1723_v8 = vld [vmem:[#allocation8 + $0x14] ss:$8 sps:$4 sm:$0xff]   ;;  %696 = vmatprep.subr.bf16.mxu0 %v1720_v6  ;;  %v1725_v9 = vld [vmem:[#allocation8 + $0x10] ss:$8 sps:$4 sm:$0xff]   ;;  %v1726_v10 = vld [vmem:[#allocation8 + $0x24] ss:$8 sps:$4 sm:$0xff]  }
 0x108   : > { %697 = vmatpush1.bf16.msra.mxu0 %v1722_v7  ;;  %v1728_v35 = vld [vmem:[#allocation8 + $0x20] ss:$8 sps:$4 sm:$0xff]   ;;  %v1729_v36 = vld [vmem:[#allocation8 + $0x34] ss:$8 sps:$4 sm:$0xff]   ;;  %v1731_v37 = vld [vmem:[#allocation8 + $0x30] ss:$8 sps:$4 sm:$0xff]  }
 0x109   : > { %520 = vadd.xlane.f32.xlu0 %v513_v2  ;;  %698 = vmatprep.subr.bf16.mxu0 %v1723_v8  ;;  %v1732_v38 = vld [vmem:[#allocation8 + $0x44] ss:$8 sps:$4 sm:$0xff]   ;;  %v1734_v39 = vld [vmem:[#allocation8 + $0x40] ss:$8 sps:$4 sm:$0xff]   ;;  %v1735_v40 = vld [vmem:[#allocation8 + $0x54] ss:$8 sps:$4 sm:$0xff]  }
 0x10a   : > { %524 = vadd.xlane.f32.xlu1 %v515_v3  ;;  %v1737_v41 = vld [vmem:[#allocation8 + $0x50] ss:$8 sps:$4 sm:$0xff]   ;;  %v1738_v42 = vld [vmem:[#allocation8 + $0x64] ss:$8 sps:$4 sm:$0xff]   ;;  %v1740_v43 = vld [vmem:[#allocation8 + $0x60] ss:$8 sps:$4 sm:$0xff]  }
 0x10b   : > { %v1741_v44 = vld [vmem:[#allocation8 + $0x74] ss:$8 sps:$4 sm:$0xff]   ;;  %v1743_v45 = vld [vmem:[#allocation8 + $0x70] ss:$8 sps:$4 sm:$0xff]   ;;  %s1497_s8 = sshll.u32 %s3049_s23, 5  ;;  %vm948_vm14 = vcmask 1044480  }
 0x10c   : > { %699 = vmatpush1.bf16.msra.mxu0 %v1725_v9  ;;  %s1498_s30 = sadd.s32 4294967288, %s1497_s8  ;;  %s3058_s13 = sld [smem:[#allocation38_spill]] }
 0x10d   : > { %526 = vadd.xlane.f32.xlu0 %v516_v4  ;;  %700 = vmatprep.subr.bf16.mxu0 %v1726_v10  ;;  %s3059_s18 = sld [smem:[#allocation22_spill]]  ;;  %s1515_s1 = sshll.u32 %s3049_s23, 2 }
 0x10e   : > { %528 = vadd.xlane.f32.xlu1 %v517_v5  ;;  %s3060_s20 = sld [smem:[#allocation40_spill]]  ;;  %s500_s26 = scalar_lea.vmem [#allocation11], %s1469_s24 }
 0x10f   : > { %s1287_s25 = sshll.u32 %s500_s26, 4  ;;  %s3061_s28 = sld [smem:[#allocation41_spill]]  ;;  %s2860_s25 = int_to_ptr.vmem [resolvable:$true] %s1287_s25 }
 0x110   : > { %701 = vmatpush1.bf16.msra.mxu0 %v1728_v35  ;;  %s1272_s8 = scalar_lea.sflag [#allocation4], %s2567_s6  ;;  %p3062_p5 = scmp.ne.s32.totalorder %s3019_s9, 0 }
 0x111   : > { %702 = vmatprep.subr.bf16.mxu0 %v1729_v36  ;;  %s2124_s10 = smov [#allocation11]  }
 0x112   : > { %s1958_s19 = sshll.u32 %s2124_s10, 4  ;;  %s1959_s19 = int_to_ptr.vmem [resolvable:$false] %s1958_s19 }
 0x113   : > { %s1516_s4 = sshll.u32 %s3059_s18, 3  ;;  %p1961_p10 = scmp.lt.s32.totalorder %s2860_s25, %s1959_s19 }
 0x114   : > { %703 = vmatpush1.bf16.msra.mxu0 %v1731_v37  ;;  %s1284_s29 = sadd.s32 %s1516_s4, %s1515_s1 }
 0x115   : > { %704 = vmatprep.subr.bf16.mxu0 %v1732_v38  ;;  %s1517_s27 = sshll.u32 %s1284_s29, 7 }
 0x118   : > { %705 = vmatpush1.bf16.msra.mxu0 %v1734_v39 }
 0x119   : > { %706 = vmatprep.subr.bf16.mxu0 %v1735_v40 }
 0x11c   : > { %707 = vmatpush1.bf16.msra.mxu0 %v1737_v41 }
 0x11d   : > { %708 = vmatprep.subr.bf16.mxu0 %v1738_v42 }
 0x120   : > { %709 = vmatpush1.bf16.msra.mxu0 %v1740_v43 }
 0x121   : > { %710 = vmatprep.subr.bf16.mxu0 %v1741_v44 }
 0x124   : > { %711 = vmatpush1.bf16.msra.mxu0 %v1743_v45 }
 0x192   : > { %v519_v11 = vpop.xlane.xlu0 %518 }
 0x193   : > { %v523_v12 = vpop.xlane.xlu1 %522  ;;  %v531_v13 = vmul.f32 0.0078125, %v519_v11 }
 0x194   : > { %v533_v14 = vmul.f32 0.0078125, %v523_v12 }
 0x195   : > { %v2592_v15 = vsub.f32 %v512_v0, %v531_v13 }
 0x196   : > { %v2594_v16 = vsub.f32 %v514_v1, %v533_v14  ;;  %v521_v17 = vpop.xlane.xlu0 %520 }
 0x197   : > { %v525_v18 = vpop.xlane.xlu1 %524  ;;  %v532_v19 = vmul.f32 0.0078125, %v521_v17  ;;  %v543_v20 = vmul.f32 %v2592_v15, %v2592_v15  ;;  %v1744_v17 = vld [vmem:[#allocation10] sm:$0xff]  }
 0x198   : > { %v534_v21 = vmul.f32 0.0078125, %v525_v18  ;;  %v545_v24 = vmul.f32 %v2594_v16, %v2594_v16  ;;  %v1745_v18 = vld [vmem:[#allocation10 + $0x8] sm:$0xff]   ;;  %1536 = vmatprep.subr.bf16.mxu1 %v1744_v17 }
 0x199   : > { %v2598_v22 = vsub.f32 %v513_v2, %v532_v19  ;;  %549 = vadd.xlane.f32.xlu0 %v543_v20  ;;  %1537 = vmatpush3.bf16.msra.mxu1 %v1744_v17  ;;  %v1746_v19 = vld [vmem:[#allocation10 + $0x10] sm:$0xff]   ;;  %v1748_v20 = vld [vmem:[#allocation10 + $0x20] sm:$0xff]  }
 0x19a   : > { %v2600_v23 = vsub.f32 %v515_v3, %v534_v21  ;;  %v527_v25 = vpop.xlane.xlu0 %526  ;;  %1538 = vmatprep.subr.bf16.mxu1 %v1745_v18  ;;  %v1749_v21 = vld [vmem:[#allocation10 + $0x28] sm:$0xff]  }
 0x19b   : > { %v529_v26 = vpop.xlane.xlu1 %528  ;;  %v535_v27 = vmul.f32 0.0078125, %v527_v25  ;;  %v544_v28 = vmul.f32 %v2598_v22, %v2598_v22 }
 0x19c   : > { %v536_v29 = vmul.f32 0.0078125, %v529_v26  ;;  %v546_v32 = vmul.f32 %v2600_v23, %v2600_v23 }
 0x19d   : > { %v2606_v30 = vsub.f32 %v516_v4, %v535_v27  ;;  %553 = vadd.xlane.f32.xlu0 %v545_v24  ;;  %551 = vadd.xlane.f32.xlu1 %v544_v28  ;;  %v606_v24 = vlaneseq  ;;  %v604_v27 = vld [vmem:[%s3050_s3] sm:$0x3]  ;;  %s2865_s3 = scalar_lea.hbm %s3061_s28, %s1517_s27 }
 0x19e   : > { %v2608_v31 = vsub.f32 %v517_v5, %v536_v29  ;;  %1539 = vmatpush3.bf16.msra.mxu1 %v1745_v18 }
 0x19f   : > { %v547_v33 = vmul.f32 %v2606_v30, %v2606_v30  ;;  %1540 = vmatprep.subr.bf16.mxu1 %v1746_v19  ;;  %v2622_v25 = vshrl.u32 %v606_v24, 7 }
 0x1a0   : > { %v548_v34 = vmul.f32 %v2608_v31, %v2608_v31 }
 0x1a1   : > { %555 = vadd.xlane.f32.xlu1 %v546_v32  ;;  %557 = vadd.xlane.f32.xlu0 %v547_v33  ;;  %v612_v26 = vsub.s32 1, %v2622_v25 }
 0x1a2   : > { %1541 = vmatpush3.bf16.msra.mxu1 %v1746_v19  ;;  %v807_v19 = vadd.s32 40, %v2622_v25 }
 0x1a3   : > { %v613_v28 = vrot.slane %v604_v27, %v612_v26 }
 0x1a5   : > { %559 = vadd.xlane.f32.xlu1 %v548_v34 }
 0x226   : > { %v550_v47 = vpop.xlane.xlu0 %549 }
 0x227   : > { %v561_v48 = vmul.f32 0.0078125, %v550_v47 }
 0x229   : > { %v567_v49 = vadd.f32 1e-05, %v561_v48 }
 0x22a   : > { %v552_v50 = vpop.xlane.xlu1 %551  ;;  %v554_v51 = vpop.xlane.xlu0 %553 }
 0x22b   : > { %v562_v52 = vmul.f32 0.0078125, %v552_v50  ;;  %1752 = vrsqrt.f32 %v567_v49  ;;  %v563_v54 = vmul.f32 0.0078125, %v554_v51  ;;  %v803_v51 = vadd.s32 8, %v2622_v25 }
 0x22d   : > { %v568_v53 = vadd.f32 1e-05, %v562_v52  ;;  %v569_v57 = vadd.f32 1e-05, %v563_v54  ;;  %v608_v54 = vsub.s32 0, %v2622_v25 }
 0x22e   : > { %v556_v55 = vpop.xlane.xlu1 %555  ;;  %v558_v59 = vpop.xlane.xlu0 %557 }
 0x22f   : > { %1754 = vrsqrt.f32 %v568_v53  ;;  %v564_v56 = vmul.f32 0.0078125, %v556_v55  ;;  %v565_v62 = vmul.f32 0.0078125, %v558_v59 }
 0x231   : > { %v570_v58 = vadd.f32 1e-05, %v564_v56  ;;  %v571_v2 = vadd.f32 1e-05, %v565_v62  ;;  %v904_v62 = vsub.s32 2, %v2622_v25 }
 0x232   : > { %v560_v60 = vpop.xlane.xlu1 %559 }
 0x233   : > { %1756 = vrsqrt.f32 %v570_v58  ;;  %v566_v61 = vmul.f32 0.0078125, %v560_v60  ;;  %v853_v58 = vld [vmem:[%s3051_s11] sm:$0x7f]  ;;  %s1960_s11 = scalar_lea.vmem %s1959_s19, 1024 }
 0x234   : > { %1758 = vrsqrt.f32 %v569_v57 }
 0x235   : > { %v1753_v63 = vpop.eup %1752  ;;  %v572_v0 = vadd.f32 1e-05, %v566_v61  ;;  %v804_v61 = vadd.s32 16, %v2622_v25 }
 0x236   : > { %v579_v3 = vmul.f32 %v1753_v63, %v2592_v15 }
 0x237   : > { %1760 = vrsqrt.f32 %v572_v0 }
 0x238   : > { %1762 = vrsqrt.f32 %v571_v2  ;;  %v2653_v2 = vrot.slane %v853_v58, %v608_v54 }
 0x239   : > { %v1755_v1 = vpop.eup %1754 }
 0x23a   : > { %v580_v4 = vmul.f32 %v1755_v1, %v2598_v22  ;;  %v1750_v22 = vld [vmem:[#allocation10 + $0x30] sm:$0xff]   ;;  %v609_v1 = vrot.slane %v604_v27, %v608_v54 }
 0x23c   : > { %v585_v5 = vpack.c.bf16 %v580_v4, %v579_v3  ;;  %v805_v3 = vadd.s32 24, %v2622_v25 }
 0x23d   : > { %v1757_v6 = vpop.eup %1756 }
 0x23e   : > { %729 = vmatmul.mubr.bf16.vlgmr.msra.gmra.mrb[0].mxu0 %v585_v5  ;;  %v1759_v7 = vpop.eup %1758  ;;  %v582_v8 = vmul.f32 %v1757_v6, %v2600_v23  ;;  %v1751_v23 = vld [vmem:[#allocation10 + $0x38] sm:$0xff]   ;;  %v968_v5 = vsub.s32 4, %v2622_v25  ;;  %v1002_v6 = vsub.s32 5, %v2622_v25 }
 0x23f   : > { %738 = vmatprep.mubr.bf16.mxu0 %v2123_v46  ;;  %v581_v9 = vmul.f32 %v1759_v7, %v2594_v16  ;;  %v1747_v16 = vld [vmem:[#allocation10 + $0x18] sm:$0xff]  }
 0x240   : > { %1542 = vmatprep.subr.bf16.mxu1 %v1747_v16 }
 0x241   : > { %v586_v10 = vpack.c.bf16 %v582_v8, %v581_v9  ;;  %v1761_v11 = vpop.eup %1760  ;;  %1543 = vmatpush3.bf16.msra.mxu1 %v1747_v16  ;;  %v1036_v9 = vsub.s32 6, %v2622_v25  ;;  %v2669_v16 = vrot.slane %v853_v58, %v968_v5 }
 0x242   : > { %v1763_v12 = vpop.eup %1762  ;;  %v584_v13 = vmul.f32 %v1761_v11, %v2608_v31  ;;  %1544 = vmatprep.subr.bf16.mxu1 %v1748_v20 }
 0x243   : > { %v583_v14 = vmul.f32 %v1763_v12, %v2606_v30  ;;  %v2661_v12 = vrot.slane %v853_v58, %v612_v26 }
 0x245   : > { %v587_v15 = vpack.c.bf16 %v584_v13, %v583_v14  ;;  %1545 = vmatpush3.bf16.msra.mxu1 %v1748_v20  ;;  %v2663_v13 = vrot.slane %v853_v58, %v904_v62  ;;  %v806_v14 = vadd.s32 32, %v2622_v25  ;;  %v2671_v20 = vrot.slane %v853_v58, %v1002_v6 }
 0x246   : > { %739 = vmatmul.mubr.bf16.gmra.mrb[4].mxu0 %v586_v10  ;;  %1546 = vmatprep.subr.bf16.mxu1 %v1749_v21  ;;  %v938_v10 = vsub.s32 3, %v2622_v25 }
 0x247   : > { %748 = vmatprep.mubr.bf16.mxu0 %v2123_v46  ;;  %v2637_v46 = vstv %s1498_s30  ;;  %s1954_s30 = scalar_lea.vmem %s2860_s25, 512 }
 0x248   : > { %v811_v55 = vadd.s32 %v2637_v46, %v2622_v25  ;;  %v812_v63 = vadd.s32 %v2637_v46, %v803_v51  ;;  %v813_v8 = vadd.s32 %v2637_v46, %v804_v61  ;;  %v814_v17 = vadd.s32 %v2637_v46, %v805_v3  ;;  %p1955_p12 = scmp.ne.s32.totalorder %s2860_s25, %s1954_s30  ;;  %p1962_p0 = scmp.lt.s32.totalorder %s1960_s11, %s1954_s30 }
 0x249   : > { %1547 = vmatpush3.bf16.msra.mxu1 %v1749_v21  ;;  %v2681_v24 = vrot.slane %v853_v58, %v938_v10  ;;  %v2685_v27 = vadd.s32 %v2637_v46, %v806_v14 }
 0x24a   : > { %1548 = vmatprep.subr.bf16.mxu1 %v1750_v22  ;;  %vm817_vm0 = vcmp.ge.s32.totalorder %v811_v55, 0  ;;  %vm823_vm1 = vcmp.lt.s32.totalorder %v811_v55, 64  ;;  %vm818_vm2 = vcmp.ge.s32.totalorder %v812_v63, 0  ;;  %vm824_vm3 = vcmp.lt.s32.totalorder %v812_v63, 64  ;;  %p1956_p2 = pnand %p1955_p12, %p3062_p5  ;;  %p1963_p11 = por %p1962_p0, %p1961_p10 }
 0x24b   : > { %vm2675_vm4 = vmand %vm817_vm0, %vm823_vm1  ;;  %vm819_vm5 = vcmp.ge.s32.totalorder %v813_v8, 0  ;;  %vm825_vm6 = vcmp.lt.s32.totalorder %v813_v8, 64  ;;  %vm820_vm8 = vcmp.ge.s32.totalorder %v814_v17, 0  ;;  %vm826_vm9 = vcmp.lt.s32.totalorder %v814_v17, 64 }
 0x24c   : > { %vm2689_vm7 = vmand %vm818_vm2, %vm824_vm3  ;;  %vm821_vm12 = vcmp.ge.s32.totalorder %v2685_v27, 0  ;;  %vm827_vm13 = vcmp.lt.s32.totalorder %v2685_v27, 64  ;;  %vm980_vm3 = vcmask 1043456   ;;  %p1957_p3 = pneg %p1956_p2 }
 0x24d   : > { %1549 = vmatpush3.bf16.msra.mxu1 %v1750_v22  ;;  %vm2717_vm15 = vmand %vm819_vm5, %vm825_vm6  ;;  %vm1014_vm6 = vcmask 1042432  }
 0x24e   : > { %749 = vmatmul.mubr.bf16.gmra.mrb[8].mxu0 %v587_v15  ;;  %1550 = vmatprep.subr.bf16.mxu1 %v1751_v23  ;;  %vm832_vm2 = vmand %vm820_vm8, %vm826_vm9  ;;  %vm1141_vm8 = vsmask.f32 5376  ;;  %p1964_p8 = pnand %p1963_p11, %p1957_p3 }
 0x251   : > { %1551 = vmatpush3.bf16.msra.mxu1 %v1751_v23  ;;  %v2679_v23 = vrot.slane %v853_v58, %v1036_v9 }
 0x311   : > { %v2628_v29 = vpop.f32.mrb[0].mxu0 }
 0x312   : > { %v732_v30 = vpop.f32.mrb[1].mxu0  ;;  %v731_v18 = vadd.f32 %v2628_v29, %v609_v1 }
 0x313   : > { %v733_v31 = vadd.f32 %v732_v30, %v613_v28  ;;  %v2630_v32 = vpop.f32.mrb[2].mxu0 }
 0x314   : > { %v736_v33 = vpop.f32.mrb[3].mxu0  ;;  %v735_v25 = vadd.f32 %v2630_v32, %v609_v1 }
 0x315   : > { %v1491_v34 = vmul.f32 -1.442695, %v733_v31  ;;  %v737_v35 = vadd.f32 %v736_v33, %v613_v28 }
 0x317   : > { %1764 = vpow2.f32 %v1491_v34  ;;  %v1492_v36 = vmul.f32 -1.442695, %v737_v35  ;;  %v2697_v34 = vadd.s32 %v2637_v46, %v807_v19 }
 0x319   : > { %1766 = vpow2.f32 %v1492_v36  ;;  %v2632_v37 = vpop.f32.mrb[4].mxu0  ;;  %vm822_vm0 = vcmp.ge.s32.totalorder %v2697_v34, 0  ;;  %vm828_vm1 = vcmp.lt.s32.totalorder %v2697_v34, 64 }
 0x31a   : > { %v742_v38 = vpop.f32.mrb[5].mxu0  ;;  %v741_v33 = vadd.f32 %v2632_v37, %v609_v1  ;;  %vm834_vm5 = vmand %vm822_vm0, %vm828_vm1 }
 0x31b   : > { %v743_v39 = vadd.f32 %v742_v38, %v613_v28  ;;  %v2635_v40 = vpop.f32.mrb[6].mxu0 }
 0x31c   : > { %v746_v41 = vpop.f32.mrb[7].mxu0  ;;  %v745_v38 = vadd.f32 %v2635_v40, %v609_v1 }
 0x31d   : > { %v1493_v42 = vmul.f32 -1.442695, %v743_v39  ;;  %v747_v43 = vadd.f32 %v746_v41, %v613_v28 }
 0x31f   : > { %1768 = vpow2.f32 %v1493_v42  ;;  %v1494_v44 = vmul.f32 -1.442695, %v747_v43 }
 0x321   : > { %v1765_v45 = vpop.eup %1764  ;;  %1770 = vpow2.f32 %v1494_v44  ;;  %v2639_v47 = vpop.f32.mrb[8].mxu0 }
 0x322   : > { %v777_v48 = vadd.f32 1.0, %v1765_v45  ;;  %v752_v49 = vpop.f32.mrb[9].mxu0  ;;  %v751_v44 = vadd.f32 %v2639_v47, %v609_v1 }
 0x323   : > { %v1767_v50 = vpop.eup %1766  ;;  %v753_v52 = vadd.f32 %v752_v49, %v613_v28  ;;  %v2642_v53 = vpop.f32.mrb[10].mxu0 }
 0x324   : > { %1772 = vrcp.f32 %v777_v48  ;;  %v778_v56 = vadd.f32 1.0, %v1767_v50  ;;  %v756_v57 = vpop.f32.mrb[11].mxu0  ;;  %v2709_v37 = vadd.f32 %v2642_v53, %v609_v1 }
 0x325   : > { %v1495_v59 = vmul.f32 -1.442695, %v753_v52  ;;  %v757_v60 = vadd.f32 %v756_v57, %v613_v28 }
 0x326   : > { %1774 = vrcp.f32 %v778_v56 }
 0x327   : > { %1776 = vpow2.f32 %v1495_v59  ;;  %v1496_v0 = vmul.f32 -1.442695, %v757_v60 }
 0x329   : > { %v1769_v4 = vpop.eup %1768  ;;  %1778 = vpow2.f32 %v1496_v0 }
 0x32a   : > { %v779_v7 = vadd.f32 1.0, %v1769_v4 }
 0x32b   : > { %v1771_v11 = vpop.eup %1770 }
 0x32c   : > { %1780 = vrcp.f32 %v779_v7  ;;  %v780_v15 = vadd.f32 1.0, %v1771_v11 }
 0x32e   : > { %v1773_v21 = vpop.eup %1772  ;;  %1782 = vrcp.f32 %v780_v15 }
 0x32f   : > { %v795_v26 = vmul.f32 %v1773_v21, %v731_v18 }
 0x330   : > { %v1775_v28 = vpop.eup %1774 }
 0x331   : > { %v1777_v30 = vpop.eup %1776  ;;  %v847_v31 = vsel %vm2675_vm4, %v795_v26, 0.0  ;;  %v796_v32 = vmul.f32 %v1775_v28, %v735_v25  ;;  %vm833_vm4 = vmand %vm821_vm12, %vm827_vm13 }
 0x332   : > { %v872_v35 = vmul.f32 %v2661_v12, %v847_v31  ;;  %v906_v36 = vmul.f32 %v2663_v13, %v847_v31  ;;  %v781_v39 = vadd.f32 1.0, %v1777_v30  ;;  %v858_v42 = vmul.f32 %v2653_v2, %v847_v31 }
 0x333   : > { %v1779_v41 = vpop.eup %1778  ;;  %v848_v43 = vsel %vm2689_vm7, %v796_v32, 0.0  ;;  %vm1048_vm7 = vcmask 1041408  }
 0x334   : > { %v883_v45 = vrot.slane %v872_v35, 1  ;;  %v917_v46 = vrot.slane %v906_v36, 2  ;;  %v873_v40 = vmul.f32 %v2661_v12, %v848_v43  ;;  %1784 = vrcp.f32 %v781_v39 }
 0x335   : > { %v782_v48 = vadd.f32 1.0, %v1779_v41  ;;  %v859_v49 = vmul.f32 %v2653_v2, %v848_v43  ;;  %v907_v50 = vmul.f32 %v2663_v13, %v848_v43  ;;  %v940_v47 = vmul.f32 %v2681_v24, %v848_v43 }
 0x336   : > { %v1781_v51 = vpop.eup %1780  ;;  %v884_v53 = vrot.slane %v873_v40, 1  ;;  %v2724_v54 = vmul.f32 %v2669_v16, %v848_v43  ;;  %v2727_v55 = vmul.f32 %v2671_v20, %v848_v43  ;;  %v2730_v56 = vmul.f32 %v2679_v23, %v848_v43 }
 0x337   : > { %v797_v57 = vmul.f32 %v1781_v51, %v741_v33  ;;  %1786 = vrcp.f32 %v782_v48  ;;  %v918_v58 = vrot.slane %v907_v50, 2  ;;  %v949_v59 = vrot.slane %v940_v47, 3 }
 0x338   : > { %v1783_v60 = vpop.eup %1782  ;;  %v885_v61 = vsel %vm882_vm10, %v883_v45, %v884_v53  ;;  %v981_v62 = vrot.slane %v2724_v54, 4  ;;  %v1015_v63 = vrot.slane %v2727_v55, 5  ;;  %v1049_v0 = vrot.slane %v2730_v56, 6 }
 0x339   : > { %v2740_v1 = vsel %vm2717_vm15, %v797_v57, 0.0  ;;  %v798_v3 = vmul.f32 %v1783_v60, %v745_v38  ;;  %v897_v4 = vadd.f32 %v885_v61, %v858_v42  ;;  %v919_v5 = vsel %vm916_vm11, %v917_v46, %v918_v58 }
 0x33a   : > { %v874_v6 = vmul.f32 %v2661_v12, %v2740_v1  ;;  %v860_v7 = vmul.f32 %v2653_v2, %v2740_v1  ;;  %v908_v8 = vmul.f32 %v2663_v13, %v2740_v1  ;;  %v941_v9 = vmul.f32 %v2681_v24, %v2740_v1 }
 0x33b   : > { %v2751_v10 = vsel %vm832_vm2, %v798_v3, 0.0  ;;  %v931_v11 = vadd.f32 %v919_v5, %v897_v4  ;;  %v971_v14 = vmul.f32 %v2669_v16, %v2740_v1  ;;  %v2757_v15 = vmul.f32 %v2671_v20, %v2740_v1 }
 0x33c   : > { %v875_v17 = vmul.f32 %v2661_v12, %v2751_v10  ;;  %v861_v18 = vmul.f32 %v2653_v2, %v2751_v10  ;;  %v886_v19 = vrot.slane %v874_v6, 1  ;;  %v909_v21 = vmul.f32 %v2663_v13, %v2751_v10 }
 0x33d   : > { %v920_v22 = vrot.slane %v908_v8, 2  ;;  %v942_v26 = vmul.f32 %v2681_v24, %v2751_v10  ;;  %v950_v25 = vrot.slane %v941_v9, 3  ;;  %v961_v28 = vadd.f32 %v949_v59, %v931_v11 }
 0x33e   : > { %v1785_v29 = vpop.eup %1784  ;;  %v887_v30 = vsel %vm882_vm10, %v884_v53, %v886_v19  ;;  %v888_v31 = vrot.slane %v875_v17, 1  ;;  %v922_v32 = vrot.slane %v909_v21, 2  ;;  %v972_v33 = vmul.f32 %v2669_v16, %v2751_v10 }
 0x33f   : > { %v799_v35 = vmul.f32 %v1785_v29, %v751_v44  ;;  %v898_v36 = vadd.f32 %v887_v30, %v859_v49  ;;  %v921_v38 = vsel %vm916_vm11, %v918_v58, %v920_v22  ;;  %v951_v39 = vsel %vm948_vm14, %v949_v59, %v950_v25 }
 0x340   : > { %v889_v41 = vsel %vm882_vm10, %v886_v19, %v888_v31  ;;  %v923_v42 = vsel %vm916_vm11, %v920_v22, %v922_v32  ;;  %v952_v43 = vrot.slane %v942_v26, 3  ;;  %v982_v27 = vrot.slane %v971_v14, 4 }
 0x341   : > { %v1787_v45 = vpop.eup %1786  ;;  %v2778_v46 = vsel %vm833_vm4, %v799_v35, 0.0  ;;  %v899_v44 = vadd.f32 %v889_v41, %v860_v7  ;;  %v932_v40 = vadd.f32 %v921_v38, %v898_v36  ;;  %v984_v48 = vrot.slane %v972_v33, 4 }
 0x342   : > { %v2786_v49 = vmul.f32 %v2661_v12, %v2778_v46  ;;  %v800_v50 = vmul.f32 %v1787_v45, %v2709_v37  ;;  %v2791_v47 = vmul.f32 %v2663_v13, %v2778_v46  ;;  %v2795_v51 = vmul.f32 %v2681_v24, %v2778_v46 }
 0x343   : > { %v933_v34 = vadd.f32 %v923_v42, %v899_v44  ;;  %v953_v52 = vsel %vm948_vm14, %v950_v25, %v952_v43  ;;  %v962_v53 = vadd.f32 %v951_v39, %v932_v40  ;;  %v973_v57 = vmul.f32 %v2669_v16, %v2778_v46 }
 0x344   : > { %v852_v12 = vsel %vm834_vm5, %v800_v50, 0.0  ;;  %v890_v58 = vrot.slane %v2786_v49, 1  ;;  %v924_v37 = vrot.slane %v2791_v47, 2  ;;  %v954_v13 = vrot.slane %v2795_v51, 3 }
 0x345   : > { %v974_v59 = vmul.f32 %v2669_v16, %v852_v12  ;;  %v1008_v24 = vmul.f32 %v2671_v20, %v852_v12  ;;  %v1042_v60 = vmul.f32 %v2679_v23, %v852_v12  ;;  %v963_v61 = vadd.f32 %v953_v52, %v933_v34 }
 0x346   : > { %v891_v3 = vsel %vm882_vm10, %v888_v31, %v890_v58  ;;  %v925_v4 = vsel %vm916_vm11, %v922_v32, %v924_v37  ;;  %v955_v5 = vsel %vm948_vm14, %v952_v43, %v954_v13  ;;  %v983_v6 = vsel %vm980_vm3, %v981_v62, %v982_v27 }
 0x347   : > { %v988_v7 = vrot.slane %v974_v59, 4  ;;  %v1022_v8 = vrot.slane %v1008_v24, 5  ;;  %v1056_v16 = vrot.slane %v1042_v60, 6  ;;  %v900_v9 = vadd.f32 %v891_v3, %v861_v18 }
 0x348   : > { %v985_v11 = vsel %vm980_vm3, %v982_v27, %v984_v48  ;;  %v986_v14 = vrot.slane %v973_v57, 4  ;;  %v995_v17 = vadd.f32 %v981_v62, %v961_v28  ;;  %v996_v19 = vadd.f32 %v983_v6, %v962_v53 }
 0x349   : > { %v934_v21 = vadd.f32 %v925_v4, %v900_v9  ;;  %v997_v22 = vadd.f32 %v985_v11, %v963_v61  ;;  %v1006_v26 = vmul.f32 %v2671_v20, %v2751_v10  ;;  %v1007_v25 = vmul.f32 %v2671_v20, %v2778_v46 }
 0x34a   : > { %v987_v29 = vsel %vm980_vm3, %v984_v48, %v986_v14  ;;  %v1016_v30 = vrot.slane %v2757_v15, 5  ;;  %v1029_v18 = vadd.f32 %v1015_v63, %v995_v17  ;;  %v1039_v54 = vmul.f32 %v2679_v23, %v2740_v1  ;;  %v1499_v1 = vld [vmem:[%s3058_s13] ss:$0 sm:$0xff] }
 0x34b   : > { %v964_v62 = vadd.f32 %v955_v5, %v934_v21  ;;  %v1018_v28 = vrot.slane %v1006_v26, 5  ;;  %v1020_v31 = vrot.slane %v1007_v25, 5  ;;  %v1040_v32 = vmul.f32 %v2679_v23, %v2751_v10 }
 0x34c   : > { %v1017_v20 = vsel %vm1014_vm6, %v1015_v63, %v1016_v30  ;;  %v1041_v33 = vmul.f32 %v2679_v23, %v2778_v46  ;;  %v1050_v15 = vrot.slane %v1039_v54, 6  ;;  %v1063_v35 = vadd.f32 %v1049_v0, %v1029_v18 }
 0x34d   : > { %v998_v36 = vadd.f32 %v987_v29, %v964_v62  ;;  %v1019_v38 = vsel %vm1014_vm6, %v1016_v30, %v1018_v28  ;;  %v1021_v10 = vsel %vm1014_vm6, %v1018_v28, %v1020_v31  ;;  %v1030_v39 = vadd.f32 %v1017_v20, %v996_v19 }
 0x34e   : > { %v1031_v55 = vadd.f32 %v1019_v38, %v997_v22  ;;  %v1051_v63 = vsel %vm1048_vm7, %v1049_v0, %v1050_v15  ;;  %v1052_v23 = vrot.slane %v1040_v32, 6  ;;  %v1054_v41 = vrot.slane %v1041_v33, 6 }
 0x34f   : > { %v1032_v42 = vadd.f32 %v1021_v10, %v998_v36  ;;  %v1064_v43 = vadd.f32 %v1051_v63, %v1030_v39  ;;  %v1075_v27 = vadd.f32 %v1499_v1, %v1063_v35  ;;  %v862_v45 = vmul.f32 %v2653_v2, %v2778_v46 }
 0x350   : > { %v1053_v44 = vsel %vm1048_vm7, %v1050_v15, %v1052_v23  ;;  %v1055_v40 = vsel %vm1048_vm7, %v1052_v23, %v1054_v41  ;;  %v989_v48 = vsel %vm980_vm3, %v986_v14, %v988_v7  ;;  %v1023_v49 = vsel %vm1014_vm6, %v1020_v31, %v1022_v8 }
 0x351   : > { %v1065_v50 = vadd.f32 %v1053_v44, %v1031_v55  ;;  %v1066_v56 = vadd.f32 %v1055_v40, %v1032_v42  ;;  %v1076_v47 = vadd.f32 %v1499_v1, %v1064_v43  ;;  %v1500_v0 = vmul.f32 -1.442695, %v1075_v27 }
 0x352   : > { %v901_v34 = vadd.f32 %v890_v58, %v862_v45  ;;  %v1057_v52 = vsel %vm1048_vm7, %v1054_v41, %v1056_v16 }
 0x353   : > { %v1077_v53 = vadd.f32 %v1499_v1, %v1065_v50  ;;  %v1078_v57 = vadd.f32 %v1499_v1, %v1066_v56  ;;  %1788 = vpow2.f32 %v1500_v0  ;;  %v1501_v12 = vmul.f32 -1.442695, %v1076_v47 }
 0x354   : > { %v935_v2 = vadd.f32 %v924_v37, %v901_v34 }
 0x355   : > { %1790 = vpow2.f32 %v1501_v12  ;;  %v1502_v46 = vmul.f32 -1.442695, %v1077_v53  ;;  %v1503_v59 = vmul.f32 -1.442695, %v1078_v57 }
 0x356   : > { %v965_v24 = vadd.f32 %v954_v13, %v935_v2 }
 0x357   : > { %1792 = vpow2.f32 %v1502_v46 }
 0x358   : > { %1794 = vpow2.f32 %v1503_v59  ;;  %v999_v60 = vadd.f32 %v989_v48, %v965_v24 }
 0x35a   : > { %v1033_v61 = vadd.f32 %v1023_v49, %v999_v60 }
 0x35c   : > { %v1067_v3 = vadd.f32 %v1057_v52, %v1033_v61 }
 0x35d   : > { %v1789_v4 = vpop.eup %1788 }
 0x35e   : > { %v1095_v58 = vadd.f32 1.0, %v1789_v4  ;;  %v1079_v5 = vadd.f32 %v1499_v1, %v1067_v3 }
 0x35f   : > { %v1791_v6 = vpop.eup %1790 }
 0x360   : > { %v1096_v7 = vadd.f32 1.0, %v1791_v6  ;;  %1796 = vrcp.f32 %v1095_v58  ;;  %v1504_v8 = vmul.f32 -1.442695, %v1079_v5 }
 0x361   : > { %v1793_v16 = vpop.eup %1792 }
 0x362   : > { %v1795_v37 = vpop.eup %1794  ;;  %v1097_v9 = vadd.f32 1.0, %v1793_v16  ;;  %1798 = vrcp.f32 %v1096_v7 }
 0x363   : > { %v1098_v11 = vadd.f32 1.0, %v1795_v37  ;;  %1800 = vpow2.f32 %v1504_v8 }
 0x364   : > { %1802 = vrcp.f32 %v1097_v9 }
 0x365   : > { %1804 = vrcp.f32 %v1098_v11 }
 0x36a   : > { %v1797_v51 = vpop.eup %1796 }
 0x36b   : > { %v1110_v17 = vmul.f32 %v1797_v51, %v1075_v27  ;;  %v1505_v27 = vld [vmem:[%s3060_s20] ss:$0 sm:$0xff] }
 0x36c   : > { %v1799_v13 = vpop.eup %1798 }
 0x36d   : > { %v1801_v14 = vpop.eup %1800  ;;  %v1111_v19 = vmul.f32 %v1799_v13, %v1076_v47 }
 0x36e   : > { %v1803_v21 = vpop.eup %1802  ;;  %v1099_v22 = vadd.f32 1.0, %v1801_v14 }
 0x36f   : > { %v1805_v26 = vpop.eup %1804  ;;  %v1115_v25 = vpack.c.bf16 %v1111_v19, %v1110_v17  ;;  %v1112_v29 = vmul.f32 %v1803_v21, %v1077_v53 }
 0x370   : > { %v1113_v30 = vmul.f32 %v1805_v26, %v1078_v57  ;;  %1806 = vrcp.f32 %v1099_v22 }
 0x371   : > { %v1143_v18 = vshrl.u32 %v1115_v25, 16  ;;  %v1146_v54 = vshll.u32 %v1115_v25, 16 }
 0x372   : > { %v1116_v62 = vpack.c.bf16 %v1113_v30, %v1112_v29 }
 0x373   : > { %v1145_v28 = vrot.slane %v1143_v18, 2  ;;  %v1148_v31 = vrot.slane %v1146_v54, 3 }
 0x374   : > { %v1151_v32 = vshrl.u32 %v1116_v62, 16  ;;  %v1154_v20 = vshll.u32 %v1116_v62, 16 }
 0x375   : > { %v1149_v35 = vor.u32 %v1148_v31, %v1145_v28 }
 0x376   : > { %v1153_v33 = vrot.slane %v1151_v32, 2  ;;  %v1156_v15 = vrot.slane %v1154_v20, 3 }
 0x378   : > { %v1157_v1 = vor.u32 %v1156_v15, %v1153_v33 }
 0x37a   : > { %v1807_v36 = vpop.eup %1806  ;;  %v1158_v38 = vsel %vm1141_vm8, %v1149_v35, %v1157_v1 }
 0x37b   : > { %1552 = vmatprep.mubr.bf16.mxu1 %v1158_v38  ;;  %v1114_v10 = vmul.f32 %v1807_v36, %v1079_v5 }
 0x37d   : > { %v1117_v39 = vpack.c.bf16 %v1114_v10, %v1114_v10 }
 0x37f   : > { %v1160_v55 = vshrl.u32 %v1117_v39, 16  ;;  %v1163_v63 = vshll.u32 %v1117_v39, 16 }
 0x381   : > { %v1162_v23 = vrot.slane %v1160_v55, 2  ;;  %v1165_v41 = vrot.slane %v1163_v63, 3 }
 0x383   : > { %v1166_v42 = vor.u32 %v1165_v41, %v1162_v23 }
 0x385   : > { %v1167_v43 = vsel %vm1141_vm8, %v1157_v1, %v1166_v42 }
 0x386   : > { %1553 = vmatmul.mubr.bf16.vlgmr.msra.gmra.mrb[0].mxu1 %v1167_v43 }
 0x459   : > { %v1554_v45 = vpop.f32.mrb[0].mxu1 }
 0x45a   : > { %v1261_v44 = vadd.f32 %v1554_v45, %v1505_v27  ;;  %v1252_v40 = vpop.f32.mrb[1].mxu1 }
 0x45b   : > { %v1253_v48 = vadd.f32 %v1505_v27, %v1252_v40  ;;  %v1555_v49 = vpop.f32.mrb[2].mxu1 }
 0x45c   : > { %1269 = vst [vmem:[%s500_s26 + $0x10] sm:$0xff] %v1261_v44  ;;  %v1264_v50 = vadd.f32 %v1555_v49, %v1505_v27  ;;  %v1255_v56 = vpop.f32.mrb[3].mxu1 }
 0x45d   : > { %1267 = vst [vmem:[%s500_s26] sm:$0xff] %v1253_v48  ;;  %v1256_v47 = vadd.f32 %v1505_v27, %v1255_v56 }
 0x45e   : > { %1270 = vst [vmem:[%s500_s26 + $0x18] sm:$0xff] %v1264_v50 }
 0x45f   : > { %1268 = vst [vmem:[%s500_s26 + $0x8] sm:$0xff] %v1256_v47 }
 0x460   : > { %1967 = shalt.err (!%p1964_p8)
}
 0x461   : > { %s1968_s21 = scalar_lea.hbm %s2865_s3, 512  ;;  %s1972_s18 = scalar_lea.hbm %s3061_s28, 2048 }
 0x462   : > { %p1969_p9 = scmp.ne.s32.totalorder %s2865_s3, %s1968_s21  ;;  %p1973_p1 = scmp.lt.u32.totalorder %s2865_s3, %s3061_s28 }
 0x463   : > { %p1974_p13 = scmp.lt.u32.totalorder %s1972_s18, %s1968_s21  ;;  %p1976_p12 = scmp.lt.u32.totalorder %s1968_s21, %s2865_s3 }
 0x464   : > { %p1970_p6 = pnand %p1969_p9, %p3062_p5 }
 0x465   : > { %p1975_p7 = por %p1974_p13, %p1973_p1 }
 0x466   : > { %p1971_p4 = pneg %p1970_p6 }
 0x467   : > { %p1977_p2 = por %p1976_p12, %p1975_p7 }
 0x469   : > { %p1978_p3 = pnand %p1977_p2, %p1971_p4 }
 0x46b   : > { %1981 = shalt.err (!%p1978_p3)
}
 0x46c   : > { %s2125_s7 = smov 128   ;;  %s2126_s17 = smov 8  }
 0x46d   : > { %1570 = dma.vmem_to_hbm [thread:$0]  (%p3062_p5), %s2860_s25, 512, %s2865_s3, %s1272_s8, %s2125_s7, %s2125_s7, %s2126_s17  }
 0x46e PF: > { %p1598_p10 = scmp.ge.s32.totalorder %s2112_s22, 2  ;;  %s1302_s20 = sand.u32 1, %s2084_s15  }
 0x46f   : > { %p3063_p0 = scmp.ne.s32.totalorder %s3022_s12, 0  ;;  %s1303_s29 = scalar_lea.sflag [#allocation4], %s1302_s20 }
 0x471   : > { %p1590_p11 = pnand %p1598_p10, %p3063_p0 }
 0x473   : > { %2055 = dma.done.wait (!%p1590_p11), %s1303_s29, 512  }
 0x474   : > { %2057 = vsyncadd (!%p1590_p11), %s1303_s29, 4294966784  ;;  %s29_s22 = sadd.s32 1, %s2112_s22   ;;  %s3065_s30 = sld [smem:[#allocation18_spill]] }
 0x475   : > { %p2896_p8 = scmp.ge.s32.totalorder %s29_s22, 6   ;;  %s3066_s10 = sld [smem:[#allocation19_spill]] }
 0x476   : > { %s3067_s12 = sld [smem:[#allocation20_spill]]  ;;  %s3068_s9 = sld [smem:[#allocation30_spill]] }
 0x477   : > { %s3069_s6 = sld [smem:[#allocation21_spill]]  ;;  %s3070_s17 = sld [smem:[#allocation31_spill]] }
 0x478   : > { %s3071_s18 = sld [smem:[#allocation24_spill]]  ;;  %s3072_s19 = sld [smem:[#allocation25_spill]] }
 0x479   : > { %s3073_s20 = sld [smem:[#allocation27_spill]]  ;;  %s3074_s21 = sld [smem:[#allocation28_spill]] }
 0x47a   : > { %s3075_s11 = smov %s3095_s2  ;;  %s3076_s13 = smov %s2080_s14 }
 0x47b   : > { %s3078_s15 = smov %s2088_s16  ;;  %28 = sbr.rel (!%p2896_p8) target bundleno = 24 (0x18), region = 133 }
 0x47c   : > { %s3077_s14 = smov %s3068_s9 }
 0x47d   : > { %s3079_s16 = smov %s3069_s6 }
 0x482   :  { %1308 = vsyncpa [#allocation3], 1 }
 0x483   :  { %1310 = vsyncpa [#allocation3 + $0x1], 1 }
 0x484   :  { %1311 = vsyncpa [#allocation6], 1 }
 0x485   :  { %1313 = vsyncpa [#allocation6 + $0x1], 1 }
 0x486   :  { %1314 = vsyncpa [#allocation9], 1 }
 0x487   :  { %1315 = vsyncpa [#allocation4], 1 }
 0x488   :  { %1317 = vsyncpa [#allocation4 + $0x1], 1 }

</bundles_post_ra>
